<compile_context>
chip_gen: v7x
topology: tpu7x:2x2x1
jax: 0.10.0
libtpu: 0.0.40
codegen_flags: <defaults>
</compile_context>

<pallas_src>
import functools

import jax
import jax.numpy as jnp
from jax.experimental import pallas as pl
from jax.experimental.pallas import tpu as pltpu


def _fused_attention_kernel(
    xq_ref, xkv_ref, wq_ref, wk_ref, wv_ref, wo_ref, bo_ref,   # inputs
    o_ref,                                                      # output
    q_scr, k_scr, v_scr, m_scr, l_scr, acc_scr,                 # scratch
    *, heads, dim_head, scale):
  """Fused qkv-projection + multi-head flash attention + output projection.

  Grid: (batch, q_tiles, kv_tiles); kv is the innermost reduction axis.

  xq_ref : (1, tq, dim)            current q tile of x
  xkv_ref: (1, tk, dim)            current kv tile of x
  wq/wk/wv_ref: (dim, inner)       projection weights (inner = heads*dim_head)
  wo_ref : (heads, dim_head, dim_out)  output weight, one row-block per head
  bo_ref : (1, dim_out)
  o_ref  : (1, tq, dim_out)
  q_scr  : (heads, tq, dim_head)   scale*Q of the current q tile (input dtype)
  k_scr/v_scr: (heads, tk, dim_head)
  m_scr/l_scr: (heads, tq, 1) f32  online-softmax running max / sum
  acc_scr: (heads, tq, dim_head) f32  un-normalized output accumulator
  """
  ki = pl.program_id(2)
  nk = pl.num_programs(2)

  @pl.when(ki == 0)
  def _start_q_tile():
    # Project Q once per q-tile (full-width contraction over `dim`), fold the
    # softmax scale into Q, and lay it out head-major in VMEM scratch.
    q = jnp.dot(xq_ref[0], wq_ref[...],
                preferred_element_type=jnp.float32) * scale      # (tq, inner)
    for h in range(heads):
      q_scr[h] = q[:, h * dim_head:(h + 1) * dim_head].astype(q_scr.dtype)
    m_scr[...] = jnp.full_like(m_scr, -jnp.inf)
    l_scr[...] = jnp.zeros_like(l_scr)
    acc_scr[...] = jnp.zeros_like(acc_scr)

  # K / V projection for the current kv tile (full-width contraction over
  # `dim`), written head-major into scratch: (heads, tk, dim_head).
  k = jnp.dot(xkv_ref[0], wk_ref[...], preferred_element_type=jnp.float32)
  v = jnp.dot(xkv_ref[0], wv_ref[...], preferred_element_type=jnp.float32)
  for h in range(heads):
    sl = slice(h * dim_head, (h + 1) * dim_head)
    k_scr[h] = k[:, sl].astype(k_scr.dtype)
    v_scr[h] = v[:, sl].astype(v_scr.dtype)

  # Batched-over-heads attention scores + online softmax update.
  s = jnp.einsum('hqd,hkd->hqk', q_scr[...], k_scr[...],
                 preferred_element_type=jnp.float32)             # (h, tq, tk)
  m_prev = m_scr[...]
  m_new = jnp.maximum(m_prev, jnp.max(s, axis=-1, keepdims=True))
  alpha = jnp.exp(m_prev - m_new)
  p = jnp.exp(s - m_new)
  l_scr[...] = alpha * l_scr[...] + jnp.sum(p, axis=-1, keepdims=True)
  acc_scr[...] = alpha * acc_scr[...] + jnp.einsum(
      'hqk,hkd->hqd', p.astype(v_scr.dtype), v_scr[...],
      preferred_element_type=jnp.float32)
  m_scr[...] = m_new

  @pl.when(ki == nk - 1)
  def _finish_q_tile():
    inv_l = pl.reciprocal(l_scr[...], approx=True)               # (h, tq, 1)
    out_h = (acc_scr[...] * inv_l).astype(wo_ref.dtype)          # (h, tq, dh)
    # Head concat folded into the output projection: batched per-head matmul
    # against the matching row-block of W_out, then a sum over heads.
    out = jnp.einsum('hqd,hdo->hqo', out_h, wo_ref[...],
                     preferred_element_type=jnp.float32)         # (h, tq, do)
    out = jnp.sum(out, axis=0) + bo_ref[...].astype(jnp.float32)
    o_ref[0] = out.astype(o_ref.dtype)


def _pick_seq_block(n, candidates=(512, 256, 128)):
  """Largest sequence tile from `candidates` dividing n, else the full n."""
  for t in candidates:
    if n % t == 0:
      return t
  return n


def attention_forward(x, w_qkv, w_out, b_out, *, heads, dim_head,
                      q_block=None, kv_block=None):
  """x: (b, n, dim); w_qkv: (dim, 3*inner); w_out: (inner, dim_out); b_out: (dim_out,)."""
  b, n, dim = x.shape
  inner = heads * dim_head
  dim_out = w_out.shape[1]
  scale = dim_head ** -0.5

  tq = q_block if q_block is not None else _pick_seq_block(n)
  tk = kv_block if kv_block is not None else _pick_seq_block(n)
  assert n % tq == 0 and n % tk == 0

  # Split / reshape the weights outside the kernel (free XLA ops): per-stream
  # projection weights and W_out as one row-block per head.
  w_q = w_qkv[:, :inner]
  w_k = w_qkv[:, inner:2 * inner]
  w_v = w_qkv[:, 2 * inner:]
  w_out_h = w_out.reshape(heads, dim_head, dim_out)
  b_out2d = b_out.reshape(1, dim_out)

  kernel = functools.partial(_fused_attention_kernel,
                             heads=heads, dim_head=dim_head, scale=scale)
  grid = (b, n // tq, n // tk)
  dtype = x.dtype

  return pl.pallas_call(
      kernel,
      out_shape=jax.ShapeDtypeStruct((b, n, dim_out), dtype),
      grid_spec=pltpu.PrefetchScalarGridSpec(
          num_scalar_prefetch=0,
          grid=grid,
          in_specs=[
              pl.BlockSpec((1, tq, dim), lambda bi, qi, ki: (bi, qi, 0)),
              pl.BlockSpec((1, tk, dim), lambda bi, qi, ki: (bi, ki, 0)),
              pl.BlockSpec((dim, inner), lambda bi, qi, ki: (0, 0)),
              pl.BlockSpec((dim, inner), lambda bi, qi, ki: (0, 0)),
              pl.BlockSpec((dim, inner), lambda bi, qi, ki: (0, 0)),
              pl.BlockSpec((heads, dim_head, dim_out),
                           lambda bi, qi, ki: (0, 0, 0)),
              pl.BlockSpec((1, dim_out), lambda bi, qi, ki: (0, 0)),
          ],
          out_specs=pl.BlockSpec((1, tq, dim_out),
                                 lambda bi, qi, ki: (bi, qi, 0)),
          scratch_shapes=[
              pltpu.VMEM((heads, tq, dim_head), dtype),      # Q (head-major)
              pltpu.VMEM((heads, tk, dim_head), dtype),      # K (head-major)
              pltpu.VMEM((heads, tk, dim_head), dtype),      # V (head-major)
              pltpu.VMEM((heads, tq, 1), jnp.float32),       # running max
              pltpu.VMEM((heads, tq, 1), jnp.float32),       # running sum
              pltpu.VMEM((heads, tq, dim_head), jnp.float32),  # accumulator
          ]),
      compiler_params=pltpu.CompilerParams(
          dimension_semantics=("parallel", "parallel", "arbitrary"),
          vmem_limit_bytes=32 * 1024 * 1024),
  )(x, x, w_q, w_k, w_v, w_out_h, b_out2d)


def attention_reference(x, w_qkv, w_out, b_out, *, heads, dim_head):
  """Pure-JAX reference mirroring the PyTorch forward (se=0, out_dim=None)."""
  b, n, dim = x.shape
  inner = heads * dim_head
  scale = dim_head ** -0.5
  qkv = jnp.einsum('bnd,de->bne', x, w_qkv)
  q, k, v = jnp.split(qkv, 3, axis=-1)

  def to_heads(t):  # 'b n (h d) -> b h n d'
    return t.reshape(b, n, heads, dim_head).transpose(0, 2, 1, 3)

  q, k, v = map(to_heads, (q, k, v))
  dots = jnp.einsum('bhid,bhjd->bhij', q, k) * scale
  attn = jax.nn.softmax(dots, axis=-1)
  out = jnp.einsum('bhij,bhjd->bhid', attn, v)
  out = out.transpose(0, 2, 1, 3).reshape(b, n, inner)
  return jnp.einsum('bni,io->bno', out, w_out) + b_out


if __name__ == "__main__":
  # Small config consistent with the module: dim=32, heads=4, dim_head=8.
  B, N, DIM = 2, 8, 32
  HEADS, DIM_HEAD = 4, 8
  INNER = HEADS * DIM_HEAD

  key = jax.random.PRNGKey(0)
  kx, kq, kw, kb = jax.random.split(key, 4)

  x = jax.random.normal(kx, (B, N, DIM), dtype=jnp.float32)
  # Deterministic parameter init (nn.Linear-like scaled uniform).
  w_qkv = jax.random.uniform(kq, (DIM, 3 * INNER), jnp.float32,
                             minval=-1.0, maxval=1.0) * (DIM ** -0.5)
  w_out = jax.random.uniform(kw, (INNER, DIM), jnp.float32,
                             minval=-1.0, maxval=1.0) * (INNER ** -0.5)
  b_out = jax.random.uniform(kb, (DIM,), jnp.float32,
                             minval=-1.0, maxval=1.0) * (INNER ** -0.5)

  out = attention_forward(x, w_qkv, w_out, b_out,
                          heads=HEADS, dim_head=DIM_HEAD)
  out = jax.block_until_ready(out)

  ref = attention_reference(x, w_qkv, w_out, b_out,
                            heads=HEADS, dim_head=DIM_HEAD)
  assert out.shape == (B, N, DIM)
  # 1e-3 tolerance: online-softmax + EUP approximate-reciprocal normalization.
  assert jnp.allclose(out, ref, atol=1e-3, rtol=1e-3), "mismatch vs reference"

  print("KERNEL_OK")
</pallas_src>

<mosaic_0001>
module attributes {stable_mosaic.version = 11 : i64} {
  func.func @_fused_attention_kernel(%arg0: i32, %arg1: i32, %arg2: i32, %arg3: memref<1x8x32xf32, #tpu.memory_space<vmem>>, %arg4: memref<1x8x32xf32, #tpu.memory_space<vmem>>, %arg5: memref<32x32xf32, #tpu.memory_space<vmem>>, %arg6: memref<32x32xf32, #tpu.memory_space<vmem>>, %arg7: memref<32x32xf32, #tpu.memory_space<vmem>>, %arg8: memref<4x8x32xf32, #tpu.memory_space<vmem>>, %arg9: memref<1x32xf32, #tpu.memory_space<vmem>>, %arg10: memref<1x8x32xf32, #tpu.memory_space<vmem>>, %arg11: memref<4x8x8xf32, #tpu.memory_space<vmem>>, %arg12: memref<4x8x8xf32, #tpu.memory_space<vmem>>, %arg13: memref<4x8x8xf32, #tpu.memory_space<vmem>>, %arg14: memref<4x8x1xf32, #tpu.memory_space<vmem>>, %arg15: memref<4x8x1xf32, #tpu.memory_space<vmem>>, %arg16: memref<4x8x8xf32, #tpu.memory_space<vmem>>) attributes {dimension_semantics = [#tpu.dimension_semantics<parallel>, #tpu.dimension_semantics<parallel>, #tpu.dimension_semantics<arbitrary>], iteration_bounds = array<i64: 2, 1, 1>, scalar_prefetch = 0 : i64, scratch_operands = 6 : i64, tpu.core_type = #tpu.core_type<tc>, window_params = [{transform_indices = @transform_0, window_bounds = array<i64: 1, 8, 32>}, {transform_indices = @transform_1, window_bounds = array<i64: 1, 8, 32>}, {pipeline_mode = #tpu.pipeline_mode<synchronous>, transform_indices = @transform_2, window_bounds = array<i64: 32, 32>}, {pipeline_mode = #tpu.pipeline_mode<synchronous>, transform_indices = @transform_3, window_bounds = array<i64: 32, 32>}, {pipeline_mode = #tpu.pipeline_mode<synchronous>, transform_indices = @transform_4, window_bounds = array<i64: 32, 32>}, {pipeline_mode = #tpu.pipeline_mode<synchronous>, transform_indices = @transform_5, window_bounds = array<i64: 4, 8, 32>}, {pipeline_mode = #tpu.pipeline_mode<synchronous>, transform_indices = @transform_6, window_bounds = array<i64: 1, 32>}, {transform_indices = @transform_7, window_bounds = array<i64: 1, 8, 32>}]} {
    %c0_i32 = arith.constant 0 : i32
    %0 = arith.cmpi eq, %arg2, %c0_i32 : i32
    %1 = arith.extui %0 : i1 to i32
    %c0_i32_0 = arith.constant 0 : i32
    %2 = arith.cmpi ne, %1, %c0_i32_0 : i32
    scf.if %2 {
      %c0_65 = arith.constant 0 : index
      %c0_66 = arith.constant 0 : index
      %c0_67 = arith.constant 0 : index
      %72 = vector.load %arg3[%c0_65, %c0_66, %c0_67] : memref<1x8x32xf32, #tpu.memory_space<vmem>>, vector<1x8x32xf32>
      %73 = vector.shape_cast %72 : vector<1x8x32xf32> to vector<8x32xf32>
      %c0_68 = arith.constant 0 : index
      %c0_69 = arith.constant 0 : index
      %74 = vector.load %arg5[%c0_68, %c0_69] : memref<32x32xf32, #tpu.memory_space<vmem>>, vector<32x32xf32>
      %cst_70 = arith.constant dense<0.000000e+00> : vector<8x32xf32>
      %75 = tpu.matmul %73, %74, %cst_70 {dimension_numbers = #tpu.dot_dimension_numbers<[1], [0], [0], [1], [0, 0, 1, 1], [], []>} : vector<8x32xf32>, vector<32x32xf32>, vector<8x32xf32> -> vector<8x32xf32>
      %cst_71 = arith.constant 0.353553385 : f32
      %76 = vector.broadcast %cst_71 : f32 to vector<8x32xf32>
      %77 = arith.mulf %75, %76 : vector<8x32xf32>
      %78 = vector.extract_strided_slice %77 {offsets = [0, 0], sizes = [8, 8], strides = [1, 1]} : vector<8x32xf32> to vector<8x8xf32>
      %c0_72 = arith.constant 0 : index
      %c0_73 = arith.constant 0 : index
      %c0_74 = arith.constant 0 : index
      %79 = vector.load %arg11[%c0_72, %c0_73, %c0_74] : memref<4x8x8xf32, #tpu.memory_space<vmem>>, vector<1x8x8xf32>
      %80 = vector.shape_cast %79 : vector<1x8x8xf32> to vector<8x8xf32>
      %81 = vector.shape_cast %78 : vector<8x8xf32> to vector<1x8x8xf32>
      tpu.vector_store %arg11[%c0_72, %c0_73, %c0_74], %81 {strides = array<i32>} : memref<4x8x8xf32, #tpu.memory_space<vmem>>, vector<1x8x8xf32>,
      %82 = vector.extract_strided_slice %77 {offsets = [0, 8], sizes = [8, 8], strides = [1, 1]} : vector<8x32xf32> to vector<8x8xf32>
      %c1_75 = arith.constant 1 : index
      %c0_76 = arith.constant 0 : index
      %c0_77 = arith.constant 0 : index
      %83 = vector.load %arg11[%c1_75, %c0_76, %c0_77] : memref<4x8x8xf32, #tpu.memory_space<vmem>>, vector<1x8x8xf32>
      %84 = vector.shape_cast %83 : vector<1x8x8xf32> to vector<8x8xf32>
      %85 = vector.shape_cast %82 : vector<8x8xf32> to vector<1x8x8xf32>
      tpu.vector_store %arg11[%c1_75, %c0_76, %c0_77], %85 {strides = array<i32>} : memref<4x8x8xf32, #tpu.memory_space<vmem>>, vector<1x8x8xf32>,
      %86 = vector.extract_strided_slice %77 {offsets = [0, 16], sizes = [8, 8], strides = [1, 1]} : vector<8x32xf32> to vector<8x8xf32>
      %c2_78 = arith.constant 2 : index
      %c0_79 = arith.constant 0 : index
      %c0_80 = arith.constant 0 : index
      %87 = vector.load %arg11[%c2_78, %c0_79, %c0_80] : memref<4x8x8xf32, #tpu.memory_space<vmem>>, vector<1x8x8xf32>
      %88 = vector.shape_cast %87 : vector<1x8x8xf32> to vector<8x8xf32>
      %89 = vector.shape_cast %86 : vector<8x8xf32> to vector<1x8x8xf32>
      tpu.vector_store %arg11[%c2_78, %c0_79, %c0_80], %89 {strides = array<i32>} : memref<4x8x8xf32, #tpu.memory_space<vmem>>, vector<1x8x8xf32>,
      %90 = vector.extract_strided_slice %77 {offsets = [0, 24], sizes = [8, 8], strides = [1, 1]} : vector<8x32xf32> to vector<8x8xf32>
      %c3_81 = arith.constant 3 : index
      %c0_82 = arith.constant 0 : index
      %c0_83 = arith.constant 0 : index
      %91 = vector.load %arg11[%c3_81, %c0_82, %c0_83] : memref<4x8x8xf32, #tpu.memory_space<vmem>>, vector<1x8x8xf32>
      %92 = vector.shape_cast %91 : vector<1x8x8xf32> to vector<8x8xf32>
      %93 = vector.shape_cast %90 : vector<8x8xf32> to vector<1x8x8xf32>
      tpu.vector_store %arg11[%c3_81, %c0_82, %c0_83], %93 {strides = array<i32>} : memref<4x8x8xf32, #tpu.memory_space<vmem>>, vector<1x8x8xf32>,
      %cst_84 = arith.constant 0xFF800000 : f32
      %94 = vector.broadcast %cst_84 : f32 to vector<4x8x1xf32>
      %c0_85 = arith.constant 0 : index
      %c0_86 = arith.constant 0 : index
      %c0_87 = arith.constant 0 : index
      %95 = vector.load %arg14[%c0_85, %c0_86, %c0_87] : memref<4x8x1xf32, #tpu.memory_space<vmem>>, vector<4x8x1xf32>
      tpu.vector_store %arg14[%c0_85, %c0_86, %c0_87], %94 {strides = array<i32>} : memref<4x8x1xf32, #tpu.memory_space<vmem>>, vector<4x8x1xf32>,
      %cst_88 = arith.constant 0.000000e+00 : f32
      %96 = vector.broadcast %cst_88 : f32 to vector<4x8x1xf32>
      %c0_89 = arith.constant 0 : index
      %c0_90 = arith.constant 0 : index
      %c0_91 = arith.constant 0 : index
      %97 = vector.load %arg15[%c0_89, %c0_90, %c0_91] : memref<4x8x1xf32, #tpu.memory_space<vmem>>, vector<4x8x1xf32>
      tpu.vector_store %arg15[%c0_89, %c0_90, %c0_91], %96 {strides = array<i32>} : memref<4x8x1xf32, #tpu.memory_space<vmem>>, vector<4x8x1xf32>,
      %cst_92 = arith.constant 0.000000e+00 : f32
      %98 = vector.broadcast %cst_92 : f32 to vector<4x8x8xf32>
      %c0_93 = arith.constant 0 : index
      %c0_94 = arith.constant 0 : index
      %c0_95 = arith.constant 0 : index
      %99 = vector.load %arg16[%c0_93, %c0_94, %c0_95] : memref<4x8x8xf32, #tpu.memory_space<vmem>>, vector<4x8x8xf32>
      tpu.vector_store %arg16[%c0_93, %c0_94, %c0_95], %98 {strides = array<i32>} : memref<4x8x8xf32, #tpu.memory_space<vmem>>, vector<4x8x8xf32>,
    } else {
    }
    %c0 = arith.constant 0 : index
    %c0_1 = arith.constant 0 : index
    %c0_2 = arith.constant 0 : index
    %3 = vector.load %arg4[%c0, %c0_1, %c0_2] : memref<1x8x32xf32, #tpu.memory_space<vmem>>, vector<1x8x32xf32>
    %4 = vector.shape_cast %3 : vector<1x8x32xf32> to vector<8x32xf32>
    %c0_3 = arith.constant 0 : index
    %c0_4 = arith.constant 0 : index
    %5 = vector.load %arg6[%c0_3, %c0_4] : memref<32x32xf32, #tpu.memory_space<vmem>>, vector<32x32xf32>
    %cst = arith.constant dense<0.000000e+00> : vector<8x32xf32>
    %6 = tpu.matmul %4, %5, %cst {dimension_numbers = #tpu.dot_dimension_numbers<[1], [0], [0], [1], [0, 0, 1, 1], [], []>} : vector<8x32xf32>, vector<32x32xf32>, vector<8x32xf32> -> vector<8x32xf32>
    %c0_5 = arith.constant 0 : index
    %c0_6 = arith.constant 0 : index
    %c0_7 = arith.constant 0 : index
    %7 = vector.load %arg4[%c0_5, %c0_6, %c0_7] : memref<1x8x32xf32, #tpu.memory_space<vmem>>, vector<1x8x32xf32>
    %8 = vector.shape_cast %7 : vector<1x8x32xf32> to vector<8x32xf32>
    %c0_8 = arith.constant 0 : index
    %c0_9 = arith.constant 0 : index
    %9 = vector.load %arg7[%c0_8, %c0_9] : memref<32x32xf32, #tpu.memory_space<vmem>>, vector<32x32xf32>
    %cst_10 = arith.constant dense<0.000000e+00> : vector<8x32xf32>
    %10 = tpu.matmul %8, %9, %cst_10 {dimension_numbers = #tpu.dot_dimension_numbers<[1], [0], [0], [1], [0, 0, 1, 1], [], []>} : vector<8x32xf32>, vector<32x32xf32>, vector<8x32xf32> -> vector<8x32xf32>
    %11 = vector.extract_strided_slice %6 {offsets = [0, 0], sizes = [8, 8], strides = [1, 1]} : vector<8x32xf32> to vector<8x8xf32>
    %c0_11 = arith.constant 0 : index
    %c0_12 = arith.constant 0 : index
    %c0_13 = arith.constant 0 : index
    %12 = vector.load %arg12[%c0_11, %c0_12, %c0_13] : memref<4x8x8xf32, #tpu.memory_space<vmem>>, vector<1x8x8xf32>
    %13 = vector.shape_cast %12 : vector<1x8x8xf32> to vector<8x8xf32>
    %14 = vector.shape_cast %11 : vector<8x8xf32> to vector<1x8x8xf32>
    tpu.vector_store %arg12[%c0_11, %c0_12, %c0_13], %14 {strides = array<i32>} : memref<4x8x8xf32, #tpu.memory_space<vmem>>, vector<1x8x8xf32>,
    %15 = vector.extract_strided_slice %10 {offsets = [0, 0], sizes = [8, 8], strides = [1, 1]} : vector<8x32xf32> to vector<8x8xf32>
    %c0_14 = arith.constant 0 : index
    %c0_15 = arith.constant 0 : index
    %c0_16 = arith.constant 0 : index
    %16 = vector.load %arg13[%c0_14, %c0_15, %c0_16] : memref<4x8x8xf32, #tpu.memory_space<vmem>>, vector<1x8x8xf32>
    %17 = vector.shape_cast %16 : vector<1x8x8xf32> to vector<8x8xf32>
    %18 = vector.shape_cast %15 : vector<8x8xf32> to vector<1x8x8xf32>
    tpu.vector_store %arg13[%c0_14, %c0_15, %c0_16], %18 {strides = array<i32>} : memref<4x8x8xf32, #tpu.memory_space<vmem>>, vector<1x8x8xf32>,
    %19 = vector.extract_strided_slice %6 {offsets = [0, 8], sizes = [8, 8], strides = [1, 1]} : vector<8x32xf32> to vector<8x8xf32>
    %c1 = arith.constant 1 : index
    %c0_17 = arith.constant 0 : index
    %c0_18 = arith.constant 0 : index
    %20 = vector.load %arg12[%c1, %c0_17, %c0_18] : memref<4x8x8xf32, #tpu.memory_space<vmem>>, vector<1x8x8xf32>
    %21 = vector.shape_cast %20 : vector<1x8x8xf32> to vector<8x8xf32>
    %22 = vector.shape_cast %19 : vector<8x8xf32> to vector<1x8x8xf32>
    tpu.vector_store %arg12[%c1, %c0_17, %c0_18], %22 {strides = array<i32>} : memref<4x8x8xf32, #tpu.memory_space<vmem>>, vector<1x8x8xf32>,
    %23 = vector.extract_strided_slice %10 {offsets = [0, 8], sizes = [8, 8], strides = [1, 1]} : vector<8x32xf32> to vector<8x8xf32>
    %c1_19 = arith.constant 1 : index
    %c0_20 = arith.constant 0 : index
    %c0_21 = arith.constant 0 : index
    %24 = vector.load %arg13[%c1_19, %c0_20, %c0_21] : memref<4x8x8xf32, #tpu.memory_space<vmem>>, vector<1x8x8xf32>
    %25 = vector.shape_cast %24 : vector<1x8x8xf32> to vector<8x8xf32>
    %26 = vector.shape_cast %23 : vector<8x8xf32> to vector<1x8x8xf32>
    tpu.vector_store %arg13[%c1_19, %c0_20, %c0_21], %26 {strides = array<i32>} : memref<4x8x8xf32, #tpu.memory_space<vmem>>, vector<1x8x8xf32>,
    %27 = vector.extract_strided_slice %6 {offsets = [0, 16], sizes = [8, 8], strides = [1, 1]} : vector<8x32xf32> to vector<8x8xf32>
    %c2 = arith.constant 2 : index
    %c0_22 = arith.constant 0 : index
    %c0_23 = arith.constant 0 : index
    %28 = vector.load %arg12[%c2, %c0_22, %c0_23] : memref<4x8x8xf32, #tpu.memory_space<vmem>>, vector<1x8x8xf32>
    %29 = vector.shape_cast %28 : vector<1x8x8xf32> to vector<8x8xf32>
    %30 = vector.shape_cast %27 : vector<8x8xf32> to vector<1x8x8xf32>
    tpu.vector_store %arg12[%c2, %c0_22, %c0_23], %30 {strides = array<i32>} : memref<4x8x8xf32, #tpu.memory_space<vmem>>, vector<1x8x8xf32>,
    %31 = vector.extract_strided_slice %10 {offsets = [0, 16], sizes = [8, 8], strides = [1, 1]} : vector<8x32xf32> to vector<8x8xf32>
    %c2_24 = arith.constant 2 : index
    %c0_25 = arith.constant 0 : index
    %c0_26 = arith.constant 0 : index
    %32 = vector.load %arg13[%c2_24, %c0_25, %c0_26] : memref<4x8x8xf32, #tpu.memory_space<vmem>>, vector<1x8x8xf32>
    %33 = vector.shape_cast %32 : vector<1x8x8xf32> to vector<8x8xf32>
    %34 = vector.shape_cast %31 : vector<8x8xf32> to vector<1x8x8xf32>
    tpu.vector_store %arg13[%c2_24, %c0_25, %c0_26], %34 {strides = array<i32>} : memref<4x8x8xf32, #tpu.memory_space<vmem>>, vector<1x8x8xf32>,
    %35 = vector.extract_strided_slice %6 {offsets = [0, 24], sizes = [8, 8], strides = [1, 1]} : vector<8x32xf32> to vector<8x8xf32>
    %c3 = arith.constant 3 : index
    %c0_27 = arith.constant 0 : index
    %c0_28 = arith.constant 0 : index
    %36 = vector.load %arg12[%c3, %c0_27, %c0_28] : memref<4x8x8xf32, #tpu.memory_space<vmem>>, vector<1x8x8xf32>
    %37 = vector.shape_cast %36 : vector<1x8x8xf32> to vector<8x8xf32>
    %38 = vector.shape_cast %35 : vector<8x8xf32> to vector<1x8x8xf32>
    tpu.vector_store %arg12[%c3, %c0_27, %c0_28], %38 {strides = array<i32>} : memref<4x8x8xf32, #tpu.memory_space<vmem>>, vector<1x8x8xf32>,
    %39 = vector.extract_strided_slice %10 {offsets = [0, 24], sizes = [8, 8], strides = [1, 1]} : vector<8x32xf32> to vector<8x8xf32>
    %c3_29 = arith.constant 3 : index
    %c0_30 = arith.constant 0 : index
    %c0_31 = arith.constant 0 : index
    %40 = vector.load %arg13[%c3_29, %c0_30, %c0_31] : memref<4x8x8xf32, #tpu.memory_space<vmem>>, vector<1x8x8xf32>
    %41 = vector.shape_cast %40 : vector<1x8x8xf32> to vector<8x8xf32>
    %42 = vector.shape_cast %39 : vector<8x8xf32> to vector<1x8x8xf32>
    tpu.vector_store %arg13[%c3_29, %c0_30, %c0_31], %42 {strides = array<i32>} : memref<4x8x8xf32, #tpu.memory_space<vmem>>, vector<1x8x8xf32>,
    %c0_32 = arith.constant 0 : index
    %c0_33 = arith.constant 0 : index
    %c0_34 = arith.constant 0 : index
    %43 = vector.load %arg11[%c0_32, %c0_33, %c0_34] : memref<4x8x8xf32, #tpu.memory_space<vmem>>, vector<4x8x8xf32>
    %c0_35 = arith.constant 0 : index
    %c0_36 = arith.constant 0 : index
    %c0_37 = arith.constant 0 : index
    %44 = vector.load %arg12[%c0_35, %c0_36, %c0_37] : memref<4x8x8xf32, #tpu.memory_space<vmem>>, vector<4x8x8xf32>
    "tpu.trace_start"() <{level = 10 : i32, message = "hqd,hkd->hqk"}> : () -> ()
    %cst_38 = arith.constant dense<0.000000e+00> : vector<4x8x8xf32>
    %45 = tpu.matmul %43, %44, %cst_38 {dimension_numbers = #tpu.dot_dimension_numbers<[2], [2], [1], [1], [0, 0, 0, 1, 1, 1], [0], [0]>} : vector<4x8x8xf32>, vector<4x8x8xf32>, vector<4x8x8xf32> -> vector<4x8x8xf32>
    "tpu.trace_stop"() : () -> ()
    %c0_39 = arith.constant 0 : index
    %c0_40 = arith.constant 0 : index
    %c0_41 = arith.constant 0 : index
    %46 = vector.load %arg14[%c0_39, %c0_40, %c0_41] : memref<4x8x1xf32, #tpu.memory_space<vmem>>, vector<4x8x1xf32>
    %cst_42 = arith.constant dense<0xFF800000> : vector<4x8xf32>
    %47 = vector.multi_reduction <maximumf>, %45, %cst_42 [2] : vector<4x8x8xf32> to vector<4x8xf32>
    %48 = vector.shape_cast %47 : vector<4x8xf32> to vector<4x8x1xf32>
    %49 = arith.maximumf %46, %48 : vector<4x8x1xf32>
    %50 = arith.subf %46, %49 : vector<4x8x1xf32>
    %51 = math.exp %50 : vector<4x8x1xf32>
    %52 = vector.broadcast %49 : vector<4x8x1xf32> to vector<4x8x8xf32>
    %53 = arith.subf %45, %52 : vector<4x8x8xf32>
    %54 = math.exp %53 : vector<4x8x8xf32>
    %c0_43 = arith.constant 0 : index
    %c0_44 = arith.constant 0 : index
    %c0_45 = arith.constant 0 : index
    %55 = vector.load %arg15[%c0_43, %c0_44, %c0_45] : memref<4x8x1xf32, #tpu.memory_space<vmem>>, vector<4x8x1xf32>
    %56 = arith.mulf %51, %55 : vector<4x8x1xf32>
    %cst_46 = arith.constant dense<0.000000e+00> : vector<4x8xf32>
    %57 = vector.multi_reduction <add>, %54, %cst_46 [2] : vector<4x8x8xf32> to vector<4x8xf32>
    %58 = vector.shape_cast %57 : vector<4x8xf32> to vector<4x8x1xf32>
    %59 = arith.addf %56, %58 : vector<4x8x1xf32>
    %c0_47 = arith.constant 0 : index
    %c0_48 = arith.constant 0 : index
    %c0_49 = arith.constant 0 : index
    %60 = vector.load %arg15[%c0_47, %c0_48, %c0_49] : memref<4x8x1xf32, #tpu.memory_space<vmem>>, vector<4x8x1xf32>
    tpu.vector_store %arg15[%c0_47, %c0_48, %c0_49], %59 {strides = array<i32>} : memref<4x8x1xf32, #tpu.memory_space<vmem>>, vector<4x8x1xf32>,
    %c0_50 = arith.constant 0 : index
    %c0_51 = arith.constant 0 : index
    %c0_52 = arith.constant 0 : index
    %61 = vector.load %arg16[%c0_50, %c0_51, %c0_52] : memref<4x8x8xf32, #tpu.memory_space<vmem>>, vector<4x8x8xf32>
    %62 = vector.broadcast %51 : vector<4x8x1xf32> to vector<4x8x8xf32>
    %63 = arith.mulf %62, %61 : vector<4x8x8xf32>
    %c0_53 = arith.constant 0 : index
    %c0_54 = arith.constant 0 : index
    %c0_55 = arith.constant 0 : index
    %64 = vector.load %arg13[%c0_53, %c0_54, %c0_55] : memref<4x8x8xf32, #tpu.memory_space<vmem>>, vector<4x8x8xf32>
    "tpu.trace_start"() <{level = 10 : i32, message = "hqk,hkd->hqd"}> : () -> ()
    %cst_56 = arith.constant dense<0.000000e+00> : vector<4x8x8xf32>
    %65 = tpu.matmul %54, %64, %cst_56 {dimension_numbers = #tpu.dot_dimension_numbers<[2], [1], [1], [2], [0, 0, 0, 1, 1, 2], [0], [0]>} : vector<4x8x8xf32>, vector<4x8x8xf32>, vector<4x8x8xf32> -> vector<4x8x8xf32>
    "tpu.trace_stop"() : () -> ()
    %66 = arith.addf %63, %65 : vector<4x8x8xf32>
    %c0_57 = arith.constant 0 : index
    %c0_58 = arith.constant 0 : index
    %c0_59 = arith.constant 0 : index
    %67 = vector.load %arg16[%c0_57, %c0_58, %c0_59] : memref<4x8x8xf32, #tpu.memory_space<vmem>>, vector<4x8x8xf32>
    tpu.vector_store %arg16[%c0_57, %c0_58, %c0_59], %66 {strides = array<i32>} : memref<4x8x8xf32, #tpu.memory_space<vmem>>, vector<4x8x8xf32>,
    %c0_60 = arith.constant 0 : index
    %c0_61 = arith.constant 0 : index
    %c0_62 = arith.constant 0 : index
    %68 = vector.load %arg14[%c0_60, %c0_61, %c0_62] : memref<4x8x1xf32, #tpu.memory_space<vmem>>, vector<4x8x1xf32>
    tpu.vector_store %arg14[%c0_60, %c0_61, %c0_62], %49 {strides = array<i32>} : memref<4x8x1xf32, #tpu.memory_space<vmem>>, vector<4x8x1xf32>,
    %c0_i32_63 = arith.constant 0 : i32
    %69 = arith.cmpi eq, %arg2, %c0_i32_63 : i32
    %70 = arith.extui %69 : i1 to i32
    %c0_i32_64 = arith.constant 0 : i32
    %71 = arith.cmpi ne, %70, %c0_i32_64 : i32
    scf.if %71 {
      %c0_65 = arith.constant 0 : index
      %c0_66 = arith.constant 0 : index
      %c0_67 = arith.constant 0 : index
      %72 = vector.load %arg15[%c0_65, %c0_66, %c0_67] : memref<4x8x1xf32, #tpu.memory_space<vmem>>, vector<4x8x1xf32>
      %73 = tpu.reciprocal %72 {approx = true} : vector<4x8x1xf32> -> vector<4x8x1xf32>
      %c0_68 = arith.constant 0 : index
      %c0_69 = arith.constant 0 : index
      %c0_70 = arith.constant 0 : index
      %74 = vector.load %arg16[%c0_68, %c0_69, %c0_70] : memref<4x8x8xf32, #tpu.memory_space<vmem>>, vector<4x8x8xf32>
      %75 = vector.broadcast %73 : vector<4x8x1xf32> to vector<4x8x8xf32>
      %76 = arith.mulf %74, %75 : vector<4x8x8xf32>
      %c0_71 = arith.constant 0 : index
      %c0_72 = arith.constant 0 : index
      %c0_73 = arith.constant 0 : index
      %77 = vector.load %arg8[%c0_71, %c0_72, %c0_73] : memref<4x8x32xf32, #tpu.memory_space<vmem>>, vector<4x8x32xf32>
      "tpu.trace_start"() <{level = 10 : i32, message = "hqd,hdo->hqo"}> : () -> ()
      %cst_74 = arith.constant dense<0.000000e+00> : vector<4x8x32xf32>
      %78 = tpu.matmul %76, %77, %cst_74 {dimension_numbers = #tpu.dot_dimension_numbers<[2], [1], [1], [2], [0, 0, 0, 1, 1, 2], [0], [0]>} : vector<4x8x8xf32>, vector<4x8x32xf32>, vector<4x8x32xf32> -> vector<4x8x32xf32>
      "tpu.trace_stop"() : () -> ()
      %cst_75 = arith.constant dense<0.000000e+00> : vector<8x32xf32>
      %79 = vector.multi_reduction <add>, %78, %cst_75 [0] : vector<4x8x32xf32> to vector<8x32xf32>
      %c0_76 = arith.constant 0 : index
      %c0_77 = arith.constant 0 : index
      %80 = vector.load %arg9[%c0_76, %c0_77] : memref<1x32xf32, #tpu.memory_space<vmem>>, vector<1x32xf32>
      %81 = vector.broadcast %80 : vector<1x32xf32> to vector<8x32xf32>
      %82 = arith.addf %79, %81 : vector<8x32xf32>
      %c0_78 = arith.constant 0 : index
      %c0_79 = arith.constant 0 : index
      %c0_80 = arith.constant 0 : index
      %83 = vector.load %arg10[%c0_78, %c0_79, %c0_80] : memref<1x8x32xf32, #tpu.memory_space<vmem>>, vector<1x8x32xf32>
      %84 = vector.shape_cast %83 : vector<1x8x32xf32> to vector<8x32xf32>
      %85 = vector.shape_cast %82 : vector<8x32xf32> to vector<1x8x32xf32>
      tpu.vector_store %arg10[%c0_78, %c0_79, %c0_80], %85 {strides = array<i32>} : memref<1x8x32xf32, #tpu.memory_space<vmem>>, vector<1x8x32xf32>,
    } else {
    }
    return
  }
  func.func @transform_0(%arg0: i32, %arg1: i32, %arg2: i32) -> (i32, i32, i32) {
    %c0_i32 = arith.constant 0 : i32
    %c0_i32_0 = arith.constant 0 : i32
    return %arg0, %arg1, %c0_i32 : i32, i32, i32
  }
  func.func @transform_1(%arg0: i32, %arg1: i32, %arg2: i32) -> (i32, i32, i32) {
    %c0_i32 = arith.constant 0 : i32
    %c0_i32_0 = arith.constant 0 : i32
    return %arg0, %arg2, %c0_i32 : i32, i32, i32
  }
  func.func @transform_2(%arg0: i32, %arg1: i32, %arg2: i32) -> (i32, i32) {
    %c0_i32 = arith.constant 0 : i32
    %c0_i32_0 = arith.constant 0 : i32
    %c0_i32_1 = arith.constant 0 : i32
    return %c0_i32, %c0_i32_0 : i32, i32
  }
  func.func @transform_3(%arg0: i32, %arg1: i32, %arg2: i32) -> (i32, i32) {
    %c0_i32 = arith.constant 0 : i32
    %c0_i32_0 = arith.constant 0 : i32
    %c0_i32_1 = arith.constant 0 : i32
    return %c0_i32, %c0_i32_0 : i32, i32
  }
  func.func @transform_4(%arg0: i32, %arg1: i32, %arg2: i32) -> (i32, i32) {
    %c0_i32 = arith.constant 0 : i32
    %c0_i32_0 = arith.constant 0 : i32
    %c0_i32_1 = arith.constant 0 : i32
    return %c0_i32, %c0_i32_0 : i32, i32
  }
  func.func @transform_5(%arg0: i32, %arg1: i32, %arg2: i32) -> (i32, i32, i32) {
    %c0_i32 = arith.constant 0 : i32
    %c0_i32_0 = arith.constant 0 : i32
    %c0_i32_1 = arith.constant 0 : i32
    %c0_i32_2 = arith.constant 0 : i32
    return %c0_i32, %c0_i32_0, %c0_i32_1 : i32, i32, i32
  }
  func.func @transform_6(%arg0: i32, %arg1: i32, %arg2: i32) -> (i32, i32) {
    %c0_i32 = arith.constant 0 : i32
    %c0_i32_0 = arith.constant 0 : i32
    %c0_i32_1 = arith.constant 0 : i32
    return %c0_i32, %c0_i32_0 : i32, i32
  }
  func.func @transform_7(%arg0: i32, %arg1: i32, %arg2: i32) -> (i32, i32, i32) {
    %c0_i32 = arith.constant 0 : i32
    %c0_i32_0 = arith.constant 0 : i32
    return %arg0, %arg1, %c0_i32 : i32, i32, i32
  }
}

</mosaic_0001>

<bundles_post_ra>
// kernel: tpu_custom_call.1
= control target key start
LH: loop header
LB: loop body
LE: loop exit
PB: predicated region body
PF: predicated region fallthrough
CT: control target
= control target key end

     0   :  { %s3157_s0 = inlined_call_operand.hbm [shape: f32[2,8,32], index: 0, kind: input, shape index: {}]   ;;  %s3158_s1 = inlined_call_operand.hbm [shape: f32[2,8,32], index: 1, kind: input, shape index: {}]   ;;  %s3159_s2 = inlined_call_operand.hbm [shape: f32[32,32], index: 2, kind: input, shape index: {}]   ;;  %s3160_s3 = inlined_call_operand.hbm [shape: f32[32,32], index: 3, kind: input, shape index: {}]   ;;  %s3161_s4 = inlined_call_operand.hbm [shape: f32[32,32], index: 4, kind: input, shape index: {}]   ;;  %s3162_s5 = inlined_call_operand.hbm [shape: f32[4,8,32], index: 5, kind: input, shape index: {}]   ;;  %s3163_s6 = inlined_call_operand.vmem [shape: f32[1,32], index: 6, kind: input, shape index: {}]   ;;  %s3164_s7 = inlined_call_operand.hbm [shape: f32[2,8,32], index: 7, kind: output, shape index: {}]  }
   0x1   :  { %3171 = sst [smem:[#allocation27_spill]] %s3159_s2 }
   0x2   :  { %3172 = sst [smem:[#allocation28_spill]] %s3160_s3 }
   0x3   :  { %3173 = sst [smem:[#allocation29_spill]] %s3161_s4 }
   0x4   :  { %3174 = sst [smem:[#allocation30_spill]] %s3162_s5 }
   0x5   :  { %3175 = sst [smem:[#allocation31_spill]] %s3164_s7 }
   0x6   :  { %12 = vsyncpa [#allocation9], 0 }
   0x7   :  { %14 = vsyncpa [#allocation9 + $0x1], 0 }
   0x8   :  { %15 = vsyncpa [#allocation12], 0 }
   0x9   :  { %17 = vsyncpa [#allocation12 + $0x1], 0 }
   0xa   :  { %18 = vsyncpa [#allocation15], 0 }
   0xb   :  { %19 = vsyncpa [#allocation18], 0 }
   0xc   :  { %20 = vsyncpa [#allocation10], 0 }
   0xd   :  { %22 = vsyncpa [#allocation10 + $0x1], 0  ;;  %s2638_s24 = smov 0   ;;  %s2640_s25 = smov 0  }
   0xe   :  { %s2642_s26 = smov 0   ;;  %s2644_s27 = smov 0  }
   0xf   :  { %s2646_s28 = smov 0   ;;  %s2648_s29 = smov 0  }
  0x10 LB: > { %s2669_s30 = sadd.s32 4294967295, %s2579_s29   ;;  %p1973_p0 = scmp.ge.s32.totalorder %s2579_s29, 1  ;;  %s2579_s29 = sphi %s2648_s29, %s28_s29   ;;  %s2575_s28 = sphi %s2646_s28, %s3207_s28   ;;  %s2571_s27 = sphi %s2644_s27, %s3206_s27   ;;  %s2567_s26 = sphi %s2642_s26, %s3205_s26   ;;  %s2563_s25 = sphi %s2640_s25, %s3204_s25   ;;  %s2559_s24 = sphi %s2638_s24, %s3203_s24  }
  0x11   : > { %p3166_p1 = scmp.eq.s32.totalorder %s2669_s30, 0  ;;  %p241_p2 = scmp.lt.s32.totalorder %s2579_s29, 3 }
  0x12   : > { %s2581_s9 = smov [#allocation13]   ;;  %s2582_s12 = smov [#allocation14]  }
  0x13   : > { %p2674_p3 = pnand %p1973_p0, %p241_p2  ;;  %s253_s10 = sshll.u32 %s2581_s9, 4  ;;  %s2678_s10 = int_to_ptr.vmem [resolvable:$true] %s253_s10 }
  0x14   : > { %s266_s13 = sshll.u32 %s2582_s12, 4  ;;  %s2583_s14 = smov [#allocation16]   ;;  %s2689_s13 = int_to_ptr.vmem [resolvable:$true] %s266_s13 }
  0x15   : > { %s3176_s8 = scalar_select %p2674_p3, 1, 0 }
  0x16   : > { %p2187_p4 = pneg %p2674_p3  ;;  %s2691_s15 = sshll.u32 %s2583_s14, 4  ;;  %s280_s15 = int_to_ptr.vmem [resolvable:$true] %s2691_s15 }
  0x17   : > { %s3178_s2 = sld [smem:[#allocation27_spill]] }
  0x18   : > { %p2685_p6 = pnand %p2187_p4, %p3166_p1 }
  0x1a   : > { %p2701_p8 = pneg %p2685_p6 }
  0x1d   : > { %s2309_s18 = scalar_lea.hbm %s3178_s2, 512 }
  0x1e   : > { %p2310_p7 = scmp.ne.s32.totalorder %s3178_s2, %s2309_s18  ;;  %p2316_p11 = scmp.lt.u32.totalorder %s2309_s18, %s3178_s2 }
  0x20   : > { %p2312_p9 = pnand %p2701_p8, %p2310_p7 }
  0x22   : > { %p2313_p10 = pneg %p2312_p9 }
  0x24   : > { %p2318_p12 = pnand %p2316_p11, %p2313_p10 }
  0x26   : > { %2321 = shalt.err (!%p2318_p12)
}
  0x27   : > { %s2322_s9 = scalar_lea.vmem %s2678_s10, 512  ;;  %p2330_p4 = scmp.lt.s32.totalorder %s2678_s10, %s2678_s10 }
  0x28   : > { %p2323_p13 = scmp.ne.s32.totalorder %s2678_s10, %s2322_s9  ;;  %p2331_p5 = scmp.lt.s32.totalorder %s2322_s9, %s2322_s9 }
  0x2a   : > { %p2325_p0 = pnand %p2323_p13, %p2701_p8  ;;  %p2332_p7 = por %p2331_p5, %p2330_p4 }
  0x2c   : > { %p2326_p2 = pneg %p2325_p0 }
  0x2e   : > { %p2333_p9 = pnand %p2332_p7, %p2326_p2 }
  0x30   : > { %2336 = shalt.err (!%p2333_p9)
}
  0x31   : > { %s2584_s12 = smov 128   ;;  %s2585_s14 = smov 8  }
  0x32   : > { %2190 = dma.hbm_to_vmem [thread:$0]  (!%p2685_p6), %s3178_s2, 512, %s2678_s10, [#allocation12], %s2584_s12, %s2584_s12, %s2585_s14  }
  0x33   : > { %s3180_s3 = sld [smem:[#allocation28_spill]] }
  0x39   : > { %s2337_s20 = scalar_lea.hbm %s3180_s3, 512 }
  0x3a   : > { %p2338_p5 = scmp.ne.s32.totalorder %s3180_s3, %s2337_s20  ;;  %p2344_p12 = scmp.lt.u32.totalorder %s2337_s20, %s3180_s3 }
  0x3c   : > { %p2340_p10 = pnand %p2338_p5, %p2701_p8 }
  0x3e   : > { %p2341_p11 = pneg %p2340_p10 }
  0x40   : > { %p2346_p13 = pnand %p2344_p12, %p2341_p11 }
  0x42   : > { %2349 = shalt.err (!%p2346_p13)
}
  0x43   : > { %s2350_s10 = scalar_lea.vmem %s2689_s13, 512  ;;  %p2358_p7 = scmp.lt.s32.totalorder %s2689_s13, %s2689_s13 }
  0x44   : > { %p2351_p0 = scmp.ne.s32.totalorder %s2689_s13, %s2350_s10  ;;  %p2359_p9 = scmp.lt.s32.totalorder %s2350_s10, %s2350_s10 }
  0x46   : > { %p2353_p2 = pnand %p2351_p0, %p2701_p8  ;;  %p2360_p5 = por %p2359_p9, %p2358_p7 }
  0x48   : > { %p2354_p4 = pneg %p2353_p2 }
  0x4a   : > { %p2361_p10 = pnand %p2360_p5, %p2354_p4 }
  0x4c   : > { %2364 = shalt.err (!%p2361_p10)
}
  0x4d   : > { %2193 = dma.hbm_to_vmem [thread:$0]  (!%p2685_p6), %s3180_s3, 512, %s2689_s13, [#allocation15], %s2584_s12, %s2584_s12, %s2585_s14  }
  0x4e   : > { %s3181_s4 = sld [smem:[#allocation29_spill]] }
  0x54   : > { %s2365_s19 = scalar_lea.hbm %s3181_s4, 512 }
  0x55   : > { %p2366_p11 = scmp.ne.s32.totalorder %s3181_s4, %s2365_s19  ;;  %p2372_p0 = scmp.lt.u32.totalorder %s2365_s19, %s3181_s4 }
  0x57   : > { %p2368_p12 = pnand %p2366_p11, %p2701_p8 }
  0x59   : > { %p2369_p13 = pneg %p2368_p12 }
  0x5b   : > { %p2374_p2 = pnand %p2372_p0, %p2369_p13 }
  0x5d   : > { %2377 = shalt.err (!%p2374_p2)
}
  0x5e   : > { %s2378_s10 = scalar_lea.vmem %s280_s15, 512  ;;  %p2386_p5 = scmp.lt.s32.totalorder %s280_s15, %s280_s15 }
  0x5f   : > { %p2379_p4 = scmp.ne.s32.totalorder %s280_s15, %s2378_s10  ;;  %p2387_p10 = scmp.lt.s32.totalorder %s2378_s10, %s2378_s10 }
  0x61   : > { %p2381_p7 = pnand %p2379_p4, %p2701_p8  ;;  %p2388_p1 = por %p2387_p10, %p2386_p5 }
  0x63   : > { %p2382_p9 = pneg %p2381_p7 }
  0x65   : > { %p2389_p3 = pnand %p2388_p1, %p2382_p9 }
  0x67   : > { %2392 = shalt.err (!%p2389_p3)
}
  0x68   : > { %2196 = dma.hbm_to_vmem [thread:$0]  (!%p2685_p6), %s3181_s4, 512, %s280_s15, [#allocation15], %s2584_s12, %s2584_s12, %s2585_s14  }
  0x69   : > { %s2586_s16 = smov [#allocation17]   ;;  %s3182_s5 = sld [smem:[#allocation30_spill]] }
  0x6a   : > { %s292_s17 = sshll.u32 %s2586_s16, 4  ;;  %s293_s17 = int_to_ptr.vmem [resolvable:$true] %s292_s17 }
  0x6f   : > { %s2393_s20 = scalar_lea.hbm %s3182_s5, 512 }
  0x70   : > { %p2394_p1 = scmp.ne.s32.totalorder %s3182_s5, %s2393_s20  ;;  %p2400_p12 = scmp.lt.u32.totalorder %s2393_s20, %s3182_s5 }
  0x72   : > { %p2396_p3 = pnand %p2394_p1, %p2701_p8 }
  0x74   : > { %p2397_p11 = pneg %p2396_p3 }
  0x76   : > { %p2402_p13 = pnand %p2400_p12, %p2397_p11 }
  0x78   : > { %2405 = shalt.err (!%p2402_p13)
}
  0x79   : > { %s2406_s15 = scalar_lea.vmem %s293_s17, 512  ;;  %p2414_p7 = scmp.lt.s32.totalorder %s293_s17, %s293_s17 }
  0x7a   : > { %p2407_p0 = scmp.ne.s32.totalorder %s293_s17, %s2406_s15  ;;  %p2415_p9 = scmp.lt.s32.totalorder %s2406_s15, %s2406_s15 }
  0x7c   : > { %p2409_p2 = pnand %p2407_p0, %p2701_p8  ;;  %p2416_p5 = por %p2415_p9, %p2414_p7 }
  0x7e   : > { %p2410_p4 = pneg %p2409_p2 }
  0x80   : > { %p2417_p10 = pnand %p2416_p5, %p2410_p4 }
  0x82   : > { %2420 = shalt.err (!%p2417_p10)
}
  0x83   : > { %2199 = dma.hbm_to_vmem [thread:$0]  (!%p2685_p6), %s3182_s5, 512, %s293_s17, [#allocation18], %s2584_s12, %s2584_s12, %s2585_s14  }
  0x84   : > { %s1972_s11 = sadd.s32 4294967294, %s2579_s29   ;;  %s47_s21 = sadd.s32 1, %s2575_s28 }
  0x85   : > { %p49_p8 = scmp.ge.s32.totalorder %s47_s21, 2  ;;  %s56_s16 = sadd.s32 1, %s2567_s26 }
  0x86   : > { %p63_p1 = scmp.ne.s32.totalorder %s2567_s26, %s2563_s25  ;;  %p64_p3 = scmp.eq.s32.totalorder %s2579_s29, 0 }
  0x87   : > { %s3209_s21 = smov (%p49_p8, %s47_s21), 0  ;;  %p69_p12 = scmp.ne.s32.totalorder %s2563_s25, %s2559_s24 }
  0x88   : > { %3183 = sst [smem:[#allocation26_spill]] %s3209_s21  ;;  %p2802_p11 = por %p64_p3, %p63_p1 }
  0x89   : > { %s51_s12 = ssub.s32 %s2575_s28, %s3209_s21  ;;  %p228_p6 = scmp.eq.s32.totalorder %s2669_s30, 1 }
  0x8a   : > { %p54_p13 = scmp.eq.s32.totalorder %s51_s12, 0  ;;  %p3185_p0 = scmp.eq.s32.totalorder %s2669_s30, 0 }
  0x8b   : > { %p2817_p4 = por %p228_p6, %p63_p1  ;;  %p234_p7 = scmp.eq.s32.totalorder %s1972_s11, 1 }
  0x8c   : > { %p2813_p2 = por %p3185_p0, %p69_p12  ;;  %p2215_p5 = scmp.lt.s32.totalorder %s2579_s29, 2 }
  0x8d   : > { %s3187_s17 = scalar_select %p2817_p4, 1, 0 }
  0x8e   : > { %s3186_s14 = scalar_select %p2813_p2, 1, 0 }
  0x8f   : > { %s2822_s19 = scalar_select %p54_p13, %s2567_s26, %s56_s16  }
  0x90   : > { %p2824_p9 = por %p234_p7, %p69_p12  ;;  %s309_s22 = sand.u32 1, %s2567_s26  }
  0x91   : > { %s1980_s23 = sshll.u32 %s2575_s28, 7  ;;  %s2831_s9 = sshll.u32 %s309_s22, 3 }
  0x92   : > { %s3188_s20 = scalar_select %p2824_p9, 1, 0 }
  0x93   : > { %s2836_s13 = scalar_lea.hbm %s3157_s0, %s1980_s23  ;;  %s313_s7 = scalar_lea.vmem [#allocation8], %s2831_s9 }
  0x94   : > { %s321_s11 = sshll.u32 %s313_s7, 4  ;;  %p2841_p10 = pnand %p2215_p5, %p2802_p11  ;;  %s2845_s11 = int_to_ptr.vmem [resolvable:$true] %s321_s11 }
  0x95   : > { %s2850_s15 = scalar_lea.hbm %s3158_s1, %s1980_s23  ;;  %s310_s2 = scalar_lea.sflag [#allocation9], %s309_s22 }
  0x96   : > { %s2421_s3 = scalar_lea.hbm %s2836_s13, 128  ;;  %p2423_p1 = pneg %p2841_p10 }
  0x97   : > { %p2422_p8 = scmp.ne.s32.totalorder %s2836_s13, %s2421_s3  ;;  %s2426_s4 = scalar_lea.hbm %s3157_s0, 256 }
  0x98   : > { %p2427_p12 = scmp.lt.u32.totalorder %s2836_s13, %s3157_s0  ;;  %p2428_p6 = scmp.lt.u32.totalorder %s2426_s4, %s2421_s3 }
  0x99   : > { %p2424_p3 = pnand %p2423_p1, %p2422_p8  ;;  %p2430_p0 = scmp.lt.u32.totalorder %s2421_s3, %s2836_s13 }
  0x9a   : > { %p2429_p13 = por %p2428_p6, %p2427_p12 }
  0x9b   : > { %p2425_p11 = pneg %p2424_p3 }
  0x9c   : > { %p2431_p7 = por %p2430_p0, %p2429_p13 }
  0x9e   : > { %p2432_p5 = pnand %p2431_p7, %p2425_p11 }
  0xa0   : > { %2435 = shalt.err (!%p2432_p5)
}
  0xa1   : > { %s2436_s22 = scalar_lea.vmem %s2845_s11, 128  ;;  %s2587_s23 = smov [#allocation8]  }
  0xa2   : > { %p2437_p8 = scmp.ne.s32.totalorder %s2845_s11, %s2436_s22  ;;  %s2441_s12 = sshll.u32 %s2587_s23, 4  ;;  %s2442_s12 = int_to_ptr.vmem [resolvable:$false] %s2441_s12 }
  0xa3   : > { %s2443_s5 = scalar_lea.vmem %s2442_s12, 256  ;;  %p2444_p4 = scmp.lt.s32.totalorder %s2845_s11, %s2442_s12 }
  0xa4   : > { %p2439_p3 = pnand %p2437_p8, %p2423_p1  ;;  %p2445_p12 = scmp.lt.s32.totalorder %s2443_s5, %s2436_s22 }
  0xa6   : > { %p2440_p9 = pneg %p2439_p3  ;;  %p2446_p6 = por %p2445_p12, %p2444_p4 }
  0xa8   : > { %p2447_p13 = pnand %p2446_p6, %p2440_p9 }
  0xaa   : > { %2450 = shalt.err (!%p2447_p13)
}
  0xab   : > { %2203 = dma.hbm_to_vmem [thread:$0]  (!%p2841_p10), %s2836_s13, 128, %s2845_s11, %s310_s2  }
  0xac   : > { %s328_s3 = sand.u32 1, %s2579_s29   ;;  %s332_s4 = scalar_lea.vmem [#allocation11], %s2831_s9 }
  0xad   : > { %s340_s21 = sshll.u32 %s332_s4, 4  ;;  %s329_s10 = scalar_lea.sflag [#allocation12], %s328_s3  ;;  %s341_s21 = int_to_ptr.vmem [resolvable:$true] %s340_s21 }
  0xae   : > { %s2451_s18 = scalar_lea.hbm %s2850_s15, 128  ;;  %s2456_s23 = scalar_lea.hbm %s3158_s1, 256 }
  0xaf   : > { %p2452_p4 = scmp.ne.s32.totalorder %s2850_s15, %s2451_s18  ;;  %p2457_p0 = scmp.lt.u32.totalorder %s2850_s15, %s3158_s1 }
  0xb0   : > { %p2458_p7 = scmp.lt.u32.totalorder %s2456_s23, %s2451_s18  ;;  %p2460_p8 = scmp.lt.u32.totalorder %s2451_s18, %s2850_s15 }
  0xb1   : > { %p2454_p9 = pnand %p2452_p4, %p2423_p1 }
  0xb2   : > { %p2459_p5 = por %p2458_p7, %p2457_p0 }
  0xb3   : > { %p2455_p11 = pneg %p2454_p9 }
  0xb4   : > { %p2461_p3 = por %p2460_p8, %p2459_p5 }
  0xb6   : > { %p2462_p12 = pnand %p2461_p3, %p2455_p11 }
  0xb8   : > { %2465 = shalt.err (!%p2462_p12)
}
  0xb9   : > { %s2466_s2 = scalar_lea.vmem %s341_s21, 128  ;;  %s2588_s9 = smov [#allocation11]  }
  0xba   : > { %p2467_p6 = scmp.ne.s32.totalorder %s341_s21, %s2466_s2  ;;  %s2471_s13 = sshll.u32 %s2588_s9, 4  ;;  %s2472_s13 = int_to_ptr.vmem [resolvable:$false] %s2471_s13 }
  0xbb   : > { %s2473_s11 = scalar_lea.vmem %s2472_s13, 256  ;;  %p2474_p9 = scmp.lt.s32.totalorder %s341_s21, %s2472_s13 }
  0xbc   : > { %p2469_p13 = pnand %p2467_p6, %p2423_p1  ;;  %p2475_p2 = scmp.lt.s32.totalorder %s2473_s11, %s2466_s2 }
  0xbe   : > { %p2470_p4 = pneg %p2469_p13  ;;  %p2476_p0 = por %p2475_p2, %p2474_p9 }
  0xc0   : > { %p2477_p7 = pnand %p2476_p0, %p2470_p4 }
  0xc2   : > { %2480 = shalt.err (!%p2477_p7)
}
  0xc3   : > { %2206 = dma.hbm_to_vmem [thread:$0]  (!%p2841_p10), %s2850_s15, 128, %s341_s21, %s329_s10  }
  0xc4   : > { %p3190_p11 = scmp.ne.s32.totalorder %s3176_s8, 0 }
  0xc5   : > { %s2901_s3 = sand.u32 (!%p3190_p11), 1, %s2563_s25   ;;  %p3191_p2 = scmp.ne.s32.totalorder (!%p3190_p11), %s3186_s14, 0 }
  0xc6   : > { %349 = sbr.rel (%p3190_p11) target bundleno = 1602 (0x642), region = 48  ;;  %s2904_s4 = sshll.u32 (!%p3190_p11), %s2901_s3, 3 }
  0xc7   : > { %s352_s18 = scalar_lea.sflag (!%p3190_p11), [#allocation9], %s2901_s3  ;;  %s355_s7 = scalar_lea.vmem (!%p3190_p11), [#allocation8], %s2904_s4 }
  0xcd   : > { %2534 = dma.done.wait (%p3191_p2), %s352_s18, 128  }
  0xce   : > { %2536 = vsyncadd (%p3191_p2), %s352_s18, 4294967168  ;;  %s360_s8 = sand.u32 1, %s2669_s30   ;;  %s364_s15 = scalar_lea.vmem [#allocation11], %s2904_s4 }
  0xcf   : > { %s361_s16 = scalar_lea.sflag [#allocation12], %s360_s8 }
  0xd0   : > { %2538 = dma.done.wait (%p3191_p2), %s361_s16, 128  }
  0xd1   : > { %2540 = vsyncadd (%p3191_p2), %s361_s16, 4294967168  ;;  %p3192_p10 = scmp.eq.s32.totalorder %s2669_s30, 0 }
  0xd3   : > { %2542 = dma.done.wait (%p3192_p10), [#allocation12], 512   ;;  %p3193_p1 = pmov %p3192_p10 }
  0xd5   : > { %2544 = vsyncadd (%p3193_p1), [#allocation12], 4294966784  ;;  %p3194_p5 = pmov %p3193_p1 }
  0xd6   : > { %p3195_p8 = pmov %p3193_p1 }
  0xd7   : > { %2546 = dma.done.wait (%p3194_p5), [#allocation15], 1024  }
  0xd8   : > { %2548 = vsyncadd (%p3195_p8), [#allocation15], 4294966272  ;;  %p3196_p3 = pmov %p3193_p1 }
  0xd9   : > { %p3197_p12 = pmov %p3193_p1 }
  0xda   : > { %2550 = dma.done.wait (%p3196_p3), [#allocation18], 512  }
  0xdb   : > { %2552 = vsyncadd (%p3197_p12), [#allocation18], 4294966784  ;;  %v2589_v0 = vmov 0.0|0.0   ;;  %vm500_vm0 = vcmask 64512   ;;  %vm2590_vm1 = vmmov 0   ;;  %v2591_v1 = vmov 0.0  }
  0xdc   : > { %2153 = vmatprep.subr.bf16.mxu1 %v2589_v0  ;;  %2147 = vmatprep.subr.bf16.mxu0 %v2589_v0  ;;  %527 = vst.msk [vmem:[#allocation7] sm:$0xff] %vm500_vm0, %v2591_v1  ;;  %528 = vst.msk [vmem:[#allocation7 + $0x8] sm:$0xff] %vm500_vm0, %v2591_v1  ;;  %v532_v2 = vld [vmem:[#allocation14] sm:$0xff]  ;;  %v533_v3 = vld [vmem:[#allocation14 + $0x8] sm:$0xff]  ;;  %vm425_vm2 = vcmask 261120   ;;  %s2592_s30 = smov 104  }
  0xdd   : > { %2073 = vmatprep.mubr.msk.f32.mxu1 %vm2590_vm1, %v2591_v1  ;;  %2062 = vmatprep.mubr.msk.f32.mxu0 %vm2590_vm1, %v2591_v1  ;;  %529 = vst.msk [vmem:[#allocation7 + $0x10] sm:$0xff] %vm500_vm0, %v2591_v1  ;;  %530 = vst.msk [vmem:[#allocation7 + $0x18] sm:$0xff] %vm500_vm0, %v2591_v1  ;;  %v421_v4 = vld [vmem:[#allocation13] sm:$0xff]  ;;  %v2154_v5 = vpack.c.bf16 %v533_v3, %v532_v2  ;;  %v422_v6 = vld [vmem:[#allocation13 + $0x8] sm:$0xff]  ;;  %s2593_s14 = smov 120   ;;  %s2594_s21 = smov 112  }
  0xde   : > { %v534_v7 = vld [vmem:[#allocation14 + $0x10] sm:$0xff]  ;;  %v535_v8 = vld [vmem:[#allocation14 + $0x18] sm:$0xff]  ;;  %v2148_v9 = vpack.c.bf16 %v422_v6, %v421_v4  ;;  %v420_v15 = vld [vmem:[%s355_s7] sm:$0xff]  ;;  %vm518_vm3 = vcmask 7168   ;;  %v2595_v44 = vmov -inf   ;;  %v2596_v48 = vmov 0  }
  0xdf   : > { %v423_v10 = vld [vmem:[#allocation13 + $0x10] sm:$0xff]  ;;  %v424_v11 = vld [vmem:[#allocation13 + $0x18] sm:$0xff]  ;;  %2155 = vmatpush3.bf16.msra.mxu1 %v2154_v5  ;;  %v2157_v12 = vpack.c.bf16 %v535_v8, %v534_v7  ;;  %v610_v16 = vld [vmem:[#allocation16] sm:$0xff]  ;;  %519 = vst.msk [vmem:[#allocation5] sm:$0xff] %vm518_vm3, %v2595_v44  ;;  %2283 = vset.pattern.permute.xlu1 %v2596_v48  ;;  %s2012_s23 = sshll.u32 %s2571_s27, 7  ;;  %s415_s12 = scalar_lea.vmem [#allocation19], %s2904_s4 }
  0xe0   : > { %2149 = vmatpush3.bf16.msra.mxu0 %v2148_v9  ;;  %2156 = vmatprep.subr.bf16.mxu1 %v2589_v0  ;;  %v2151_v13 = vpack.c.bf16 %v424_v11, %v423_v10  ;;  %v531_v14 = vld [vmem:[%s364_s15] sm:$0xff]  ;;  %v611_v17 = vld [vmem:[#allocation16 + $0x8] sm:$0xff]  ;;  %520 = vst.msk [vmem:[#allocation5 + $0x8] sm:$0xff] %vm518_vm3, %v2595_v44  ;;  %521 = vst.msk [vmem:[#allocation5 + $0x10] sm:$0xff] %vm518_vm3, %v2595_v44  ;;  %s1826_s5 = sshll.u32 %s415_s12, 4  ;;  %s3198_s13 = sld [smem:[#allocation31_spill]]  ;;  %s3109_s5 = int_to_ptr.vmem [resolvable:$true] %s1826_s5 }
  0xe1   : > { %2150 = vmatprep.subr.bf16.mxu0 %v2589_v0  ;;  %v2160_v18 = vpack.c.bf16 %v611_v17, %v610_v16  ;;  %v612_v19 = vld [vmem:[#allocation16 + $0x10] sm:$0xff]  ;;  %v613_v20 = vld [vmem:[#allocation16 + $0x18] sm:$0xff]  ;;  %522 = vst.msk [vmem:[#allocation5 + $0x18] sm:$0xff] %vm518_vm3, %v2595_v44  ;;  %523 = vst.msk [vmem:[#allocation6] sm:$0xff] %vm518_vm3, %v2591_v1  ;;  %2284 = vset.pattern.permute.xlu0 %v2596_v48  ;;  %s1812_s18 = scalar_lea.sflag [#allocation10], %s2901_s3  ;;  %s2481_s7 = scalar_lea.vmem %s3109_s5, 128 }
  0xe2   : > { %v2163_v21 = vpack.c.bf16 %v613_v20, %v612_v19  ;;  %524 = vst.msk [vmem:[#allocation6 + $0x8] sm:$0xff] %vm518_vm3, %v2591_v1  ;;  %525 = vst.msk [vmem:[#allocation6 + $0x10] sm:$0xff] %vm518_vm3, %v2591_v1  ;;  %p2482_p6 = scmp.ne.s32.totalorder %s3109_s5, %s2481_s7  ;;  %p3199_p13 = scmp.ne.s32.totalorder %s3187_s17, 0 }
  0xe3   : > { %2158 = vmatpush3.bf16.msra.mxu1 %v2157_v12  ;;  %526 = vst.msk [vmem:[#allocation6 + $0x18] sm:$0xff] %vm518_vm3, %v2591_v1  ;;  %s2597_s27 = smov [#allocation19]  }
  0xe4   : > { %2152 = vmatpush3.bf16.msra.mxu0 %v2151_v13  ;;  %2087 = vmatprep.subr.mxu1 %v2591_v1  ;;  %p2483_p4 = pnand %p2482_p6, %p3199_p13  ;;  %s2485_s4 = sshll.u32 %s2597_s27, 4  ;;  %s2486_s4 = int_to_ptr.vmem [resolvable:$false] %s2485_s4 }
  0xe5   : > { %2159 = vmatprep.subr.bf16.mxu0 %v2589_v0  ;;  %s2487_s8 = scalar_lea.vmem %s2486_s4, 256  ;;  %p2488_p0 = scmp.lt.s32.totalorder %s3109_s5, %s2486_s4 }
  0xe6   : > { %2074 = vmatmul.mubr.msk.f32.vlgmr.msra.gmra.mrb[0].mxu1 %vm425_vm2, %v531_v14  ;;  %v3012_v58 = vld [vmem:[#allocation5] sm:$0xff]  ;;  %s3107_s11 = scalar_lea.hbm %s3198_s13, %s2012_s23  ;;  %p2484_p9 = pneg %p2483_p4 }
  0xe7   : > { %2063 = vmatmul.mubr.msk.f32.vlgmr.msra.gmra.mrb[0].mxu0 %vm425_vm2, %v420_v15  ;;  %2089 = vmatprep.mubr.msk.f32.mxu1 %vm2590_vm1, %v2591_v1  ;;  %v3022_v62 = vld [vmem:[#allocation5 + $0x8] sm:$0xff]  ;;  %v3027_v2 = vld [vmem:[#allocation5 + $0x10] sm:$0xff]  ;;  %p2489_p7 = scmp.lt.s32.totalorder %s2487_s8, %s2481_s7 }
  0xe8   : > { %2084 = vmatprep.mubr.msk.f32.mxu0 %vm2590_vm1, %v2591_v1  ;;  %2161 = vmatpush3.bf16.msra.mxu0 %v2160_v18  ;;  %v1034_v6 = vld [vmem:[#allocation5 + $0x18] sm:$0xff] }
  0xe9   : > { %2162 = vmatprep.subr.bf16.mxu0 %v2589_v0  ;;  %p2490_p11 = por %p2489_p7, %p2488_p0 }
  0xeb   : > { %p2491_p2 = pnand %p2490_p11, %p2484_p9 }
  0xec   : > { %2164 = vmatpush3.bf16.msra.mxu0 %v2163_v21 }
  0xed   : > { %2097 = vmatprep.subr.mxu0 %v2591_v1 }
  0xef   : > { %2085 = vmatmul.mubr.msk.f32.vlgmr.msra.gmra.mrb[2].mxu0 %vm425_vm2, %v531_v14 }
  0xf0   : > { %2099 = vmatprep.mubr.msk.f32.mxu0 %vm2590_vm1, %v2591_v1 }
 0x1b9   : > { %v606_v22 = vpop.f32.mrb[0].mxu1 }
 0x1ba   : > { %685 = vst.msk [vmem:[#allocation3] sm:$0xff] %vm500_vm0, %v606_v22  ;;  %709 = vrot.lane.b32.xlu1 %v606_v22, %s2592_s30  ;;  %688 = vrot.lane.b32.xlu0 %v606_v22, %s2593_s14  ;;  %v495_v23 = vpop.f32.mrb[0].mxu0  ;;  %v2075_v24 = vpop.f32.mrb[1].mxu1 }
 0x1bb   : > { %v499_v25 = vmul.f32 0.35355338, %v495_v23  ;;  %v2064_v26 = vpop.f32.mrb[1].mxu0 }
 0x1bd   : > { %501 = vst.msk [vmem:[#allocation2] sm:$0xff] %vm500_vm0, %v499_v25 }
 0x1be   : > { %699 = vrot.lane.b32.xlu0 %v606_v22, %s2594_s21  ;;  %503 = vrot.lane.b32.xlu1 %v499_v25, %s2593_s14 }
 0x1c1   : > { %v723_v27 = vld [vmem:[#allocation3] sm:$0xff] }
 0x1c2   : > { %2088 = vmatpush3.xpose.msk.msra.mxu1 %vm500_vm0, %v723_v27  ;;  %508 = vrot.lane.b32.xlu0 %v499_v25, %s2594_s21  ;;  %v2991_v41 = vpop.f32.mrb[2].mxu0 }
 0x1c3   : > { %513 = vrot.lane.b32.xlu1 %v499_v25, %s2592_s30  ;;  %2092 = vmatprep.subr.mxu1 %v2591_v1  ;;  %686 = vst.msk [vmem:[#allocation4] sm:$0xff] %vm500_vm0, %v2991_v41  ;;  %v2086_v42 = vpop.f32.mrb[3].mxu0 }
 0x1c4   : > { %v719_v28 = vld [vmem:[#allocation2] sm:$0xff] }
 0x1c5   : > { %2090 = vmatmul.mubr.msk.f32.vlgmr.msra.gmra.mrb[2].mxu1 %vm500_vm0, %v719_v28 }
 0x1c6   : > { %2094 = vmatprep.mubr.msk.f32.mxu1 %vm2590_vm1, %v2591_v1 }
 0x1ca   : > { %v1152_v43 = vld [vmem:[#allocation4] sm:$0xff] }
 0x22c   : > { %v710_v29 = vpop.permute.xlu1 %709  ;;  %v689_v30 = vpop.permute.xlu0 %688 }
 0x22d   : > { %713 = vst.msk [vmem:[#allocation3 + $0x18] sm:$0xff] %vm500_vm0, %v710_v29  ;;  %692 = vst.msk [vmem:[#allocation3 + $0x8] sm:$0xff] %vm500_vm0, %v689_v30 }
 0x230   : > { %v700_v31 = vpop.permute.xlu0 %699  ;;  %v504_v32 = vpop.permute.xlu1 %503 }
 0x231   : > { %703 = vst.msk [vmem:[#allocation3 + $0x10] sm:$0xff] %vm500_vm0, %v700_v31  ;;  %507 = vst.msk [vmem:[#allocation2 + $0x8] sm:$0xff] %vm500_vm0, %v504_v32 }
 0x234   : > { %v509_v33 = vpop.permute.xlu0 %508  ;;  %v724_v34 = vld [vmem:[#allocation3 + $0x8] sm:$0xff]  ;;  %v726_v38 = vld [vmem:[#allocation3 + $0x18] sm:$0xff] }
 0x235   : > { %512 = vst.msk [vmem:[#allocation2 + $0x10] sm:$0xff] %vm500_vm0, %v509_v33  ;;  %v514_v35 = vpop.permute.xlu1 %513  ;;  %2093 = vmatpush3.xpose.msk.msra.mxu1 %vm500_vm0, %v724_v34 }
 0x236   : > { %517 = vst.msk [vmem:[#allocation2 + $0x18] sm:$0xff] %vm500_vm0, %v514_v35  ;;  %2102 = vmatprep.subr.mxu1 %v2591_v1 }
 0x238   : > { %v720_v36 = vld [vmem:[#allocation2 + $0x8] sm:$0xff]  ;;  %v725_v37 = vld [vmem:[#allocation3 + $0x10] sm:$0xff] }
 0x239   : > { %2095 = vmatmul.mubr.msk.f32.vlgmr.msra.gmra.mrb[4].mxu1 %vm500_vm0, %v720_v36  ;;  %2098 = vmatpush3.xpose.msk.msra.mxu0 %vm500_vm0, %v725_v37 }
 0x23a   : > { %2103 = vmatpush3.xpose.msk.msra.mxu1 %vm500_vm0, %v726_v38  ;;  %2104 = vmatprep.mubr.msk.f32.mxu1 %vm2590_vm1, %v2591_v1 }
 0x23b   : > { %2107 = vmatprep.subr.mxu0 %v2591_v1  ;;  %2112 = vmatprep.subr.mxu1 %v2591_v1 }
 0x23c   : > { %v721_v39 = vld [vmem:[#allocation2 + $0x10] sm:$0xff] }
 0x23d   : > { %2100 = vmatmul.mubr.msk.f32.vlgmr.msra.gmra.mrb[4].mxu0 %vm500_vm0, %v721_v39  ;;  %v722_v40 = vld [vmem:[#allocation2 + $0x18] sm:$0xff] }
 0x23e   : > { %2105 = vmatmul.mubr.msk.f32.vlgmr.msra.gmra.mrb[6].mxu1 %vm500_vm0, %v722_v40  ;;  %2109 = vmatprep.mubr.msk.f32.mxu0 %vm2590_vm1, %v2591_v1 }
 0x23f   : > { %2114 = vmatprep.mubr.msk.f32.mxu1 %vm2590_vm1, %v2591_v1  ;;  %2108 = vmatpush3.msra.mxu0 %v1152_v43 }
 0x240   : > { %2117 = vmatprep.subr.mxu0 %v2591_v1 }
 0x298   : > { %v799_v45 = vpop.f32.mrb[2].mxu1 }
 0x299   : > { %v1035_v46 = vsel %vm500_vm0, %v799_v45, -inf  ;;  %v2091_v47 = vpop.f32.mrb[3].mxu1 }
 0x29a   : > { %1036 = vmax.xlane.f32.xlu0 %v1035_v46 }
 0x30c   : > { %v875_v49 = vpop.f32.mrb[4].mxu1 }
 0x30d   : > { %v1038_v50 = vsel %vm500_vm0, %v875_v49, -inf  ;;  %v2096_v51 = vpop.f32.mrb[5].mxu1 }
 0x30e   : > { %1039 = vmax.xlane.f32.xlu1 %v1038_v50  ;;  %v1499_v51 = vld [vmem:[#allocation17] sm:$0xff] }
 0x310   : > { %v951_v52 = vpop.f32.mrb[4].mxu0 }
 0x311   : > { %v1027_v53 = vpop.f32.mrb[6].mxu1  ;;  %v2101_v54 = vpop.f32.mrb[5].mxu0  ;;  %v1041_v55 = vsel %vm500_vm0, %v951_v52, -inf }
 0x312   : > { %v2106_v56 = vpop.f32.mrb[7].mxu1  ;;  %1042 = vmax.xlane.f32.xlu0 %v1041_v55  ;;  %v1044_v57 = vsel %vm500_vm0, %v1027_v53, -inf  ;;  %v1096_v54 = vld [vmem:[#allocation6 + $0x8] sm:$0xff] }
 0x316   : > { %1045 = vmax.xlane.f32.xlu0 %v1044_v57  ;;  %v1097_v57 = vld [vmem:[#allocation6 + $0x10] sm:$0xff] }
 0x327   : > { %v1037_v59 = vpop.xlane.xlu0 %1036 }
 0x328   : > { %v3015_v60 = vmax.f32 %v3012_v58, %v1037_v59 }
 0x32a   : > { %v1051_v61 = vsub.f32 %v3012_v58, %v3015_v60  ;;  %1456 = vst.msk [vmem:[#allocation5] sm:$0xff] %vm518_vm3, %v3015_v60  ;;  %1065 = vperm.xlu1 %2283, %v3015_v60  }
 0x32c   : > { %v1055_v34 = vmul.f32 1.442695, %v1051_v61  ;;  %v1098_v61 = vld [vmem:[#allocation6 + $0x18] sm:$0xff] }
 0x39b   : > { %v1040_v63 = vpop.xlane.xlu1 %1039 }
 0x39c   : > { %v3025_v0 = vmax.f32 %v3022_v62, %v1040_v63  ;;  %v1124_v63 = vld [vmem:[#allocation7] sm:$0xff] }
 0x39e   : > { %v1052_v3 = vsub.f32 %v3022_v62, %v3025_v0  ;;  %1457 = vst.msk [vmem:[#allocation5 + $0x8] sm:$0xff] %vm518_vm3, %v3025_v0  ;;  %1070 = vperm.xlu0 %2284, %v3025_v0  }
 0x39f   : > { %v1043_v4 = vpop.xlane.xlu0 %1042 }
 0x3a0   : > { %v3035_v5 = vmax.f32 %v3027_v2, %v1043_v4  ;;  %v1057_v37 = vmul.f32 1.442695, %v1052_v3 }
 0x3a2   : > { %v1053_v7 = vsub.f32 %v3027_v2, %v3035_v5  ;;  %1458 = vst.msk [vmem:[#allocation5 + $0x10] sm:$0xff] %vm518_vm3, %v3035_v5  ;;  %1075 = vperm.xlu1 %2283, %v3035_v5  }
 0x3a3   : > { %v1046_v8 = vpop.xlane.xlu0 %1045 }
 0x3a4   : > { %v1050_v9 = vmax.f32 %v1034_v6, %v1046_v8  ;;  %v1059_v40 = vmul.f32 1.442695, %v1053_v7 }
 0x3a6   : > { %v1054_v10 = vsub.f32 %v1034_v6, %v1050_v9  ;;  %1459 = vst.msk [vmem:[#allocation5 + $0x18] sm:$0xff] %vm518_vm3, %v1050_v9  ;;  %1080 = vperm.xlu1 %2283, %v1050_v9  }
 0x3a8   : > { %v1061_v38 = vmul.f32 1.442695, %v1054_v10 }
 0x3a9   : > { %v1066_v11 = vpop.permute.xlu1 %1065 }
 0x3aa   : > { %v1083_v12 = vsub.f32 %v799_v45, %v1066_v11  ;;  %694 = vrot.lane.b32.xlu1 %v2991_v41, %s2593_s14  ;;  %v1095_v45 = vld [vmem:[#allocation6] sm:$0xff]  ;;  %v1500_v11 = vld [vmem:[#allocation17 + $0x8] sm:$0xff] }
 0x3ac   : > { %v1087_v13 = vmul.f32 1.442695, %v1083_v12 }
 0x3ae   : > { %2285 = vpow2.f32 %v1087_v13  ;;  %704 = vrot.lane.b32.xlu1 %v2991_v41, %s2594_s21 }
 0x3b2   : > { %714 = vrot.lane.b32.xlu1 %v2991_v41, %s2592_s30 }
 0x3b8   : > { %v2286_v14 = vpop.eup %2285 }
 0x3b9   : > { %2110 = vmatmul.mubr.msk.f32.vlgmr.msra.gmra.mrb[6].mxu0 %vm500_vm0, %v2286_v14  ;;  %v1103_v15 = vsel %vm500_vm0, %v2286_v14, 0.0 }
 0x3ba   : > { %2119 = vmatprep.mubr.msk.f32.mxu0 %vm2590_vm1, %v2591_v1 }
 0x3d6   : > { %1104 = vadd.xlane.f32.xlu1 %v1103_v15 }
 0x41d   : > { %v1071_v16 = vpop.permute.xlu0 %1070 }
 0x41e   : > { %v1084_v17 = vsub.f32 %v875_v49, %v1071_v16 }
 0x420   : > { %v1089_v18 = vmul.f32 1.442695, %v1084_v17 }
 0x421   : > { %v1076_v19 = vpop.permute.xlu1 %1075 }
 0x422   : > { %2287 = vpow2.f32 %v1089_v18  ;;  %v1085_v20 = vsub.f32 %v951_v52, %v1076_v19  ;;  %v1501_v19 = vld [vmem:[#allocation17 + $0x10] sm:$0xff] }
 0x424   : > { %v1091_v21 = vmul.f32 1.442695, %v1085_v20  ;;  %v1125_v20 = vld [vmem:[#allocation7 + $0x8] sm:$0xff] }
 0x425   : > { %v1081_v22 = vpop.permute.xlu1 %1080 }
 0x426   : > { %2289 = vpow2.f32 %v1091_v21  ;;  %v1086_v23 = vsub.f32 %v1027_v53, %v1081_v22  ;;  %v1126_v22 = vld [vmem:[#allocation7 + $0x10] sm:$0xff] }
 0x428   : > { %v1093_v24 = vmul.f32 1.442695, %v1086_v23 }
 0x429   : > { %v695_v25 = vpop.permute.xlu1 %694 }
 0x42a   : > { %2291 = vpow2.f32 %v1093_v24  ;;  %698 = vst.msk [vmem:[#allocation4 + $0x8] sm:$0xff] %vm500_vm0, %v695_v25 }
 0x42b   : > { %2293 = vpow2.f32 %v1055_v34 }
 0x42c   : > { %v2288_v26 = vpop.eup %2287  ;;  %2295 = vpow2.f32 %v1057_v37 }
 0x42d   : > { %v705_v27 = vpop.permute.xlu1 %704  ;;  %v1106_v28 = vsel %vm500_vm0, %v2288_v26, 0.0  ;;  %2297 = vpow2.f32 %v1061_v38 }
 0x42e   : > { %708 = vst.msk [vmem:[#allocation4 + $0x10] sm:$0xff] %vm500_vm0, %v705_v27  ;;  %1107 = vadd.xlane.f32.xlu0 %v1106_v28  ;;  %2299 = vpow2.f32 %v1059_v40  ;;  %v1127_v27 = vld [vmem:[#allocation7 + $0x18] sm:$0xff] }
 0x430   : > { %v2290_v29 = vpop.eup %2289 }
 0x431   : > { %v715_v30 = vpop.permute.xlu1 %714  ;;  %v1109_v31 = vsel %vm500_vm0, %v2290_v29, 0.0  ;;  %v1153_v32 = vld [vmem:[#allocation4 + $0x8] sm:$0xff] }
 0x432   : > { %718 = vst.msk [vmem:[#allocation4 + $0x18] sm:$0xff] %vm500_vm0, %v715_v30  ;;  %1110 = vadd.xlane.f32.xlu1 %v1109_v31  ;;  %2113 = vmatpush3.msra.mxu1 %v1153_v32 }
 0x433   : > { %2115 = vmatmul.mubr.msk.f32.vlgmr.msra.gmra.mrb[8].mxu1 %vm500_vm0, %v2288_v26  ;;  %2122 = vmatprep.subr.mxu1 %v2591_v1 }
 0x434   : > { %v2292_v33 = vpop.eup %2291  ;;  %2124 = vmatprep.mubr.msk.f32.mxu1 %vm2590_vm1, %v2591_v1 }
 0x435   : > { %v1112_v35 = vsel %vm500_vm0, %v2292_v33, 0.0  ;;  %v1154_v36 = vld [vmem:[#allocation4 + $0x10] sm:$0xff]  ;;  %v2294_v41 = vpop.eup %2293 }
 0x436   : > { %1113 = vadd.xlane.f32.xlu1 %v1112_v35  ;;  %2118 = vmatpush3.msra.mxu0 %v1154_v36  ;;  %v2296_v42 = vpop.eup %2295  ;;  %v1099_v46 = vmul.f32 %v2294_v41, %v1095_v45 }
 0x437   : > { %2120 = vmatmul.mubr.msk.f32.vlgmr.msra.gmra.mrb[8].mxu0 %vm500_vm0, %v2290_v29  ;;  %2127 = vmatprep.subr.mxu0 %v2591_v1  ;;  %v2298_v43 = vpop.eup %2297  ;;  %v1100_v55 = vmul.f32 %v2296_v42, %v1096_v54 }
 0x438   : > { %2129 = vmatprep.mubr.msk.f32.mxu0 %vm2590_vm1, %v2591_v1  ;;  %v2300_v44 = vpop.eup %2299  ;;  %2128 = vmatpush3.msra.mxu0 %v1499_v51  ;;  %v1102_v0 = vmul.f32 %v2298_v43, %v1098_v61 }
 0x439   : > { %v1155_v39 = vld [vmem:[#allocation4 + $0x18] sm:$0xff]  ;;  %2137 = vmatprep.subr.mxu0 %v2591_v1  ;;  %v1101_v59 = vmul.f32 %v2300_v44, %v1097_v57 }
 0x43a   : > { %2123 = vmatpush3.msra.mxu1 %v1155_v39  ;;  %v1502_v39 = vld [vmem:[#allocation17 + $0x18] sm:$0xff] }
 0x43b   : > { %2125 = vmatmul.mubr.msk.f32.vlgmr.msra.gmra.mrb[10].mxu1 %vm500_vm0, %v2292_v33  ;;  %2132 = vmatprep.subr.mxu1 %v2591_v1 }
 0x43c   : > { %2134 = vmatprep.mubr.msk.f32.mxu1 %vm2590_vm1, %v2591_v1  ;;  %2133 = vmatpush3.msra.mxu1 %v1500_v11 }
 0x43d   : > { %2142 = vmatprep.subr.mxu1 %v2591_v1 }
 0x444   : > { %1130 = vperm.xlu0 %2284, %v2294_v41  }
 0x447   : > { %1135 = vperm.xlu1 %2283, %v2296_v42  }
 0x448   : > { %1145 = vperm.xlu0 %2284, %v2298_v43  }
 0x44b   : > { %1140 = vperm.xlu1 %2283, %v2300_v44  }
 0x463   : > { %v1105_v47 = vpop.xlane.xlu1 %1104 }
 0x464   : > { %v1115_v48 = vadd.f32 %v1105_v47, %v1099_v46 }
 0x466   : > { %1120 = vst.msk [vmem:[#allocation6] sm:$0xff] %vm518_vm3, %v1115_v48 }
 0x46d   : > { %v1463_v49 = vld [vmem:[#allocation6] sm:$0xff] }
 0x46e   : > { %2301 = vrcp.f32 %v1463_v49 }
 0x478   : > { %v2302_v50 = vpop.eup %2301 }
 0x479   : > { %1477 = vperm.xlu1 %2283, %v2302_v50  }
 0x48c   : > { %v1225_v52 = vpop.f32.mrb[6].mxu0 }
 0x48d   : > { %v2111_v53 = vpop.f32.mrb[7].mxu0 }
 0x4bb   : > { %v1108_v56 = vpop.xlane.xlu0 %1107 }
 0x4bc   : > { %v1116_v58 = vadd.f32 %v1108_v56, %v1100_v55 }
 0x4be   : > { %1121 = vst.msk [vmem:[#allocation6 + $0x8] sm:$0xff] %vm518_vm3, %v1116_v58  ;;  %v2010_v58 = vld [vmem:[%s3163_s6] ss:$0 sm:$0xff] }
 0x4bf   : > { %v1111_v60 = vpop.xlane.xlu1 %1110 }
 0x4c0   : > { %v1117_v62 = vadd.f32 %v1111_v60, %v1101_v59 }
 0x4c2   : > { %1122 = vst.msk [vmem:[#allocation6 + $0x10] sm:$0xff] %vm518_vm3, %v1117_v62 }
 0x4c3   : > { %v1114_v2 = vpop.xlane.xlu1 %1113  ;;  %v1131_v3 = vpop.permute.xlu0 %1130 }
 0x4c4   : > { %v1118_v4 = vadd.f32 %v1114_v2, %v1102_v0  ;;  %v1148_v5 = vmul.f32 %v1131_v3, %v1124_v63 }
 0x4c5   : > { %v1464_v6 = vld [vmem:[#allocation6 + $0x8] sm:$0xff] }
 0x4c6   : > { %1123 = vst.msk [vmem:[#allocation6 + $0x18] sm:$0xff] %vm518_vm3, %v1118_v4  ;;  %v1448_v7 = vadd.f32 %v1225_v52, %v1148_v5  ;;  %2303 = vrcp.f32 %v1464_v6 }
 0x4c7   : > { %v1136_v14 = vpop.permute.xlu1 %1135  ;;  %v1146_v28 = vpop.permute.xlu0 %1145 }
 0x4c8   : > { %1452 = vst.msk [vmem:[#allocation7] sm:$0xff] %vm500_vm0, %v1448_v7  ;;  %v1149_v21 = vmul.f32 %v1136_v14, %v1125_v20  ;;  %v1151_v32 = vmul.f32 %v1146_v28, %v1127_v27 }
 0x4c9   : > { %v1465_v8 = vld [vmem:[#allocation6 + $0x10] sm:$0xff] }
 0x4ca   : > { %2305 = vrcp.f32 %v1465_v8 }
 0x4cb   : > { %v1141_v15 = vpop.permute.xlu1 %1140 }
 0x4cc   : > { %v1150_v26 = vmul.f32 %v1141_v15, %v1126_v22 }
 0x4cd   : > { %v1466_v9 = vld [vmem:[#allocation6 + $0x18] sm:$0xff] }
 0x4ce   : > { %2307 = vrcp.f32 %v1466_v9 }
 0x4cf   : > { %v1471_v17 = vld [vmem:[#allocation7] sm:$0xff] }
 0x4d0   : > { %v2304_v10 = vpop.eup %2303 }
 0x4d1   : > { %1482 = vperm.xlu0 %2284, %v2304_v10  }
 0x4d4   : > { %v2306_v12 = vpop.eup %2305 }
 0x4d5   : > { %1487 = vperm.xlu1 %2283, %v2306_v12  }
 0x4d8   : > { %v2308_v13 = vpop.eup %2307 }
 0x4d9   : > { %1492 = vperm.xlu0 %2284, %v2308_v13  }
 0x4f8   : > { %v1478_v16 = vpop.permute.xlu1 %1477 }
 0x4f9   : > { %v1495_v18 = vmul.f32 %v1478_v16, %v1471_v17 }
 0x4fb   : > { %2130 = vmatmul.mubr.msk.f32.vlgmr.msra.gmra.mrb[10].mxu0 %vm500_vm0, %v1495_v18 }
 0x4fc   : > { %2138 = vmatpush3.msra.mxu0 %v1501_v19  ;;  %2139 = vmatprep.mubr.msk.f32.mxu0 %vm2590_vm1, %v2591_v1 }
 0x506   : > { %v1298_v23 = vpop.f32.mrb[8].mxu1 }
 0x507   : > { %v1449_v24 = vadd.f32 %v1298_v23, %v1149_v21  ;;  %v2116_v25 = vpop.f32.mrb[9].mxu1 }
 0x509   : > { %1453 = vst.msk [vmem:[#allocation7 + $0x8] sm:$0xff] %vm500_vm0, %v1449_v24 }
 0x50a   : > { %v1371_v29 = vpop.f32.mrb[8].mxu0 }
 0x50b   : > { %v1450_v30 = vadd.f32 %v1371_v29, %v1150_v26  ;;  %v2121_v31 = vpop.f32.mrb[9].mxu0 }
 0x50d   : > { %1454 = vst.msk [vmem:[#allocation7 + $0x10] sm:$0xff] %vm500_vm0, %v1450_v30 }
 0x50e   : > { %v1444_v33 = vpop.f32.mrb[10].mxu1 }
 0x50f   : > { %v1451_v34 = vadd.f32 %v1444_v33, %v1151_v32  ;;  %v2126_v35 = vpop.f32.mrb[11].mxu1 }
 0x510   : > { %v1472_v36 = vld [vmem:[#allocation7 + $0x8] sm:$0xff] }
 0x511   : > { %1455 = vst.msk [vmem:[#allocation7 + $0x18] sm:$0xff] %vm500_vm0, %v1451_v34 }
 0x514   : > { %v1473_v41 = vld [vmem:[#allocation7 + $0x10] sm:$0xff] }
 0x518   : > { %v1474_v43 = vld [vmem:[#allocation7 + $0x18] sm:$0xff] }
 0x550   : > { %v1483_v37 = vpop.permute.xlu0 %1482 }
 0x551   : > { %v1496_v38 = vmul.f32 %v1483_v37, %v1472_v36 }
 0x553   : > { %2135 = vmatmul.mubr.msk.f32.vlgmr.msra.gmra.mrb[12].mxu1 %vm500_vm0, %v1496_v38 }
 0x554   : > { %v1488_v40 = vpop.permute.xlu1 %1487  ;;  %2143 = vmatpush3.msra.mxu1 %v1502_v39  ;;  %2144 = vmatprep.mubr.msk.f32.mxu1 %vm2590_vm1, %v2591_v1 }
 0x555   : > { %v1497_v42 = vmul.f32 %v1488_v40, %v1473_v41 }
 0x557   : > { %2140 = vmatmul.mubr.msk.f32.vlgmr.msra.gmra.mrb[12].mxu0 %vm500_vm0, %v1497_v42 }
 0x558   : > { %v1493_v44 = vpop.permute.xlu0 %1492 }
 0x559   : > { %v1498_v45 = vmul.f32 %v1493_v44, %v1474_v43 }
 0x55b   : > { %2145 = vmatmul.mubr.msk.f32.vlgmr.msra.gmra.mrb[14].mxu1 %vm500_vm0, %v1498_v45 }
 0x5ce   : > { %v1572_v46 = vpop.f32.mrb[10].mxu0 }
 0x5cf   : > { %v2131_v47 = vpop.f32.mrb[11].mxu0  ;;  %v1795_v49 = vsel %vm425_vm2, %v1572_v46, 0.0 }
 0x626   : > { %v1645_v48 = vpop.f32.mrb[12].mxu1 }
 0x627   : > { %v1796_v50 = vsel %vm425_vm2, %v1645_v48, 0.0  ;;  %v2136_v51 = vpop.f32.mrb[13].mxu1 }
 0x628   : > { %v1797_v52 = vadd.f32 %v1796_v50, %v1795_v49 }
 0x62a   : > { %v1718_v1 = vpop.f32.mrb[12].mxu0 }
 0x62b   : > { %v1798_v53 = vsel %vm425_vm2, %v1718_v1, 0.0  ;;  %v2141_v54 = vpop.f32.mrb[13].mxu0 }
 0x62c   : > { %v1799_v55 = vadd.f32 %v1798_v53, %v1797_v52 }
 0x62e   : > { %v1791_v56 = vpop.f32.mrb[14].mxu1 }
 0x62f   : > { %v1800_v57 = vsel %vm425_vm2, %v1791_v56, 0.0  ;;  %v2146_v59 = vpop.f32.mrb[15].mxu1 }
 0x630   : > { %v1801_v60 = vadd.f32 %v1800_v57, %v1799_v55 }
 0x632   : > { %v1809_v61 = vadd.f32 %v2010_v58, %v1801_v60 }
 0x634   : > { %1810 = vst.msk [vmem:[%s415_s12] sm:$0xff] %vm425_vm2, %v1809_v61 }
 0x635   : > { %2494 = shalt.err (!%p2491_p2)
}
 0x636   : > { %s2495_s3 = scalar_lea.hbm %s3107_s11, 128  ;;  %s2499_s30 = scalar_lea.hbm %s3198_s13, 256 }
 0x637   : > { %p2496_p10 = scmp.ne.s32.totalorder %s3107_s11, %s2495_s3  ;;  %p2500_p8 = scmp.lt.u32.totalorder %s3107_s11, %s3198_s13 }
 0x638   : > { %p2501_p3 = scmp.lt.u32.totalorder %s2499_s30, %s2495_s3  ;;  %p2503_p6 = scmp.lt.u32.totalorder %s2495_s3, %s3107_s11 }
 0x639   : > { %p2497_p1 = pnand %p2496_p10, %p3199_p13 }
 0x63a   : > { %p2502_p12 = por %p2501_p3, %p2500_p8 }
 0x63b   : > { %p2498_p5 = pneg %p2497_p1 }
 0x63c   : > { %p2504_p4 = por %p2503_p6, %p2502_p12 }
 0x63e   : > { %p2505_p9 = pnand %p2504_p4, %p2498_p5 }
 0x640   : > { %2508 = shalt.err (!%p2505_p9)
}
 0x641   : > { %2185 = dma.vmem_to_hbm [thread:$0]  (%p3199_p13), %s3109_s5, 128, %s3107_s11, %s1812_s18  }
 0x642 PF: > { %s1838_s10 = sand.u32 1, %s2559_s24   ;;  %p3200_p0 = scmp.ne.s32.totalorder %s3188_s20, 0 }
 0x643   : > { %p3201_p7 = scmp.ge.s32.totalorder %s2579_s29, 2  ;;  %s1839_s22 = scalar_lea.sflag [#allocation10], %s1838_s10 }
 0x645   : > { %p2208_p11 = pnand %p3201_p7, %p3200_p0 }
 0x647   : > { %2554 = dma.done.wait (!%p2208_p11), %s1839_s22, 128  }
 0x648   : > { %2556 = vsyncadd (!%p2208_p11), %s1839_s22, 4294967168  ;;  %s28_s29 = sadd.s32 1, %s2579_s29   ;;  %s3202_s17 = sld [smem:[#allocation26_spill]] }
 0x649   : > { %p25_p2 = scmp.ge.s32.totalorder %s28_s29, 4   ;;  %s3203_s24 = smov %s2563_s25 }
 0x64a   : > { %s3204_s25 = smov %s2567_s26  ;;  %s3205_s26 = smov %s2822_s19 }
 0x64b   : > { %s3206_s27 = smov %s2575_s28  ;;  %27 = sbr.rel (!%p25_p2) target bundleno = 16 (0x10), region = 139 }
 0x64e   : > { %s3207_s28 = smov %s3202_s17 }
 0x652   :  { %1844 = vsyncpa [#allocation9], 1 }
 0x653   :  { %1846 = vsyncpa [#allocation9 + $0x1], 1 }
 0x654   :  { %1847 = vsyncpa [#allocation12], 1 }
 0x655   :  { %1849 = vsyncpa [#allocation12 + $0x1], 1 }
 0x656   :  { %1850 = vsyncpa [#allocation15], 1 }
 0x657   :  { %1851 = vsyncpa [#allocation18], 1 }
 0x658   :  { %1852 = vsyncpa [#allocation10], 1 }
 0x659   :  { %1854 = vsyncpa [#allocation10 + $0x1], 1 }

</bundles_post_ra>
